<compile_context>
chip_gen: v6e
topology: v6e:2x2x1
jax: 0.10.0
libtpu: 0.0.40
codegen_flags: <defaults>
</compile_context>

<pallas_src>
import jax
import jax.numpy as jnp
import numpy as np
from jax.experimental import pallas as pl
from jax.experimental.pallas import tpu as pltpu

LANE = 128


def _round_up(x, m):
    return ((x + m - 1) // m) * m


def _matmul_bias_relu_kernel(x_ref, w_ref, b_ref, o_ref):
    # bf16 x bf16 -> f32 accumulate on the MXU; bias + ReLU epilogue in f32.
    acc = jnp.dot(x_ref[...], w_ref[...], preferred_element_type=jnp.float32)
    o_ref[...] = jnp.maximum(acc + b_ref[...], 0.0).astype(o_ref.dtype)


def _conv_matmul(patches, w2d, bias2d, out_dtype):
    """relu(patches @ w2d + bias). patches (M,K) bf16, w2d (K,N) bf16, bias2d (1,N) f32."""
    M, K = patches.shape
    N = w2d.shape[1]

    # >=2 M-blocks when possible (v7x megacore), capped so tiles stay tiny everywhere.
    tm = min(1024, max(8, _round_up(pl.cdiv(M, 2), 8)))
    grid_m = pl.cdiv(M, tm)

    out_bytes = jnp.dtype(out_dtype).itemsize
    x_tile_b = tm * K * 2
    o_tile_b = tm * N * out_bytes
    w_b = K * N * 2
    b_b = N * 4
    # Explicit, portable VMEM budget (works against v7x's 64 MiB per-TC VMEM).
    vmem_limit = int(min(64 * 1024 * 1024,
                         max(4 * 1024 * 1024,
                             4 * (x_tile_b + o_tile_b + w_b + b_b))))

    cost = pl.CostEstimate(
        flops=2 * M * K * N,
        transcendentals=0,
        bytes_accessed=M * K * 2 + w_b + b_b + M * N * out_bytes,
    )

    return pl.pallas_call(
        _matmul_bias_relu_kernel,
        out_shape=jax.ShapeDtypeStruct((M, N), out_dtype),
        grid_spec=pltpu.PrefetchScalarGridSpec(
            num_scalar_prefetch=0,
            grid=(grid_m,),
            in_specs=[
                pl.BlockSpec((tm, K), lambda i: (i, 0)),  # im2col rows, tiled over M
                pl.BlockSpec((K, N), lambda i: (0, 0)),   # full lane-padded weight
                pl.BlockSpec((1, N), lambda i: (0, 0)),   # bias row (f32)
            ],
            out_specs=pl.BlockSpec((tm, N), lambda i: (i, 0)),
        ),
        compiler_params=pltpu.CompilerParams(
            dimension_semantics=("parallel",),
            vmem_limit_bytes=vmem_limit,
        ),
        cost_estimate=cost,
    )(patches, w2d, bias2d)


def _im2col_nhwc(x, kh, kw, stride):
    """x: (B, H, W, C) -> patches (B*OH*OW, KH*KW*C), column order (kh, kw, c)."""
    B, H, W, C = x.shape
    oh = (H - kh) // stride + 1
    ow = (W - kw) // stride + 1
    cols = []
    for i in range(kh):
        for j in range(kw):
            cols.append(x[:, i:i + stride * oh:stride, j:j + stride * ow:stride, :])
    patches = jnp.stack(cols, axis=3)  # (B, OH, OW, KH*KW, C)
    return patches.reshape(B * oh * ow, kh * kw * C), oh, ow


def conv2d_relu_nhwc(x, w, b, stride, out_dtype):
    """x: (B, H, W, Cin) bf16; w: (Cout, Cin, KH, KW) [PyTorch OIHW]; b: (Cout,)."""
    B = x.shape[0]
    cout, cin, kh, kw = w.shape
    patches, oh, ow = _im2col_nhwc(x, kh, kw, stride)
    npad = _round_up(cout, LANE)
    # (kh, kw, cin)-last column order to match the im2col rows.
    w2d = w.transpose(2, 3, 1, 0).reshape(kh * kw * cin, cout).astype(jnp.bfloat16)
    w2d = jnp.pad(w2d, ((0, 0), (0, npad - cout)))
    b2d = jnp.pad(b.astype(jnp.float32).reshape(1, cout), ((0, 0), (0, npad - cout)))
    y = _conv_matmul(patches, w2d, b2d, out_dtype)  # (B*OH*OW, npad)
    return y[:, :cout].reshape(B, oh, ow, cout)


def init_params(key, input_dims):
    """Deterministic PyTorch-default-like init: U(-1/sqrt(fan_in), 1/sqrt(fan_in))."""
    cin = input_dims[0]
    shapes = [(32, cin, 8, 8), (64, 32, 4, 4), (64, 64, 3, 3)]
    params = []
    for ws in shapes:
        key, kw_, kb_ = jax.random.split(key, 3)
        fan_in = ws[1] * ws[2] * ws[3]
        bound = 1.0 / float(np.sqrt(fan_in))
        w = jax.random.uniform(kw_, ws, jnp.float32, -bound, bound)
        b = jax.random.uniform(kb_, (ws[0],), jnp.float32, -bound, bound)
        params.append((w, b))
    return params


@jax.jit
def core_net_forward(x, params):
    (w1, b1), (w2, b2), (w3, b3) = params
    x = jnp.transpose(x, (0, 2, 3, 1)).astype(jnp.bfloat16)             # NCHW -> NHWC once
    x = conv2d_relu_nhwc(x, w1, b1, stride=4, out_dtype=jnp.bfloat16)   # (B, 20, 20, 32)
    x = conv2d_relu_nhwc(x, w2, b2, stride=2, out_dtype=jnp.bfloat16)   # (B,  9,  9, 64)
    x = conv2d_relu_nhwc(x, w3, b3, stride=1, out_dtype=jnp.float32)    # (B,  7,  7, 64)
    # Single NCHW-order transpose so the flatten matches PyTorch's x.view(-1, 64*7*7).
    return jnp.transpose(x, (0, 3, 1, 2)).reshape(-1, 64 * 7 * 7)


def reference_forward(x, params):
    def conv(x, w, b, s):
        y = jax.lax.conv_general_dilated(
            x, w, window_strides=(s, s), padding="VALID",
            dimension_numbers=("NCHW", "OIHW", "NCHW"))
        return jax.nn.relu(y + b[None, :, None, None])
    (w1, b1), (w2, b2), (w3, b3) = params
    x = conv(x, w1, b1, 4)
    x = conv(x, w2, b2, 2)
    x = conv(x, w3, b3, 1)
    return x.reshape(-1, 64 * 7 * 7)


if __name__ == "__main__":
    key = jax.random.PRNGKey(0)
    kx, kp = jax.random.split(key)
    # The module hard-codes the 64*7*7 flatten, which implies 84x84 input frames.
    input_dims = (4, 84, 84)
    x = jax.random.normal(kx, (2,) + input_dims, dtype=jnp.float32)
    params = init_params(kp, input_dims)

    out = jax.block_until_ready(core_net_forward(x, params))
    assert out.shape == (2, 64 * 7 * 7), out.shape

    ref = np.asarray(reference_forward(x, params))
    # Note: matmul operands are bf16 (f32 accumulation), so tolerance is looser than f32.
    if not np.allclose(np.asarray(out), ref, atol=5e-2, rtol=5e-2):
        raise AssertionError("Pallas CoreNet output mismatches reference conv stack")

    print("KERNEL_OK")
</pallas_src>

<mosaic_0001>
module attributes {stable_mosaic.version = 11 : i64} {
  func.func @_matmul_bias_relu_kernel(%arg0: i32, %arg1: memref<400x256xbf16, #tpu.memory_space<vmem>>, %arg2: memref<256x128xbf16, #tpu.memory_space<vmem>>, %arg3: memref<1x128xf32, #tpu.memory_space<vmem>>, %arg4: memref<400x128xbf16, #tpu.memory_space<vmem>>) attributes {dimension_semantics = [#tpu.dimension_semantics<parallel>], iteration_bounds = array<i64: 2>, scalar_prefetch = 0 : i64, scratch_operands = 0 : i64, tpu.core_type = #tpu.core_type<tc>, window_params = [{transform_indices = @transform_0, window_bounds = array<i64: 400, 256>}, {pipeline_mode = #tpu.pipeline_mode<synchronous>, transform_indices = @transform_1, window_bounds = array<i64: 256, 128>}, {pipeline_mode = #tpu.pipeline_mode<synchronous>, transform_indices = @transform_2, window_bounds = array<i64: 1, 128>}, {transform_indices = @transform_3, window_bounds = array<i64: 400, 128>}]} {
    %c0 = arith.constant 0 : index
    %c0_0 = arith.constant 0 : index
    %0 = vector.load %arg1[%c0, %c0_0] : memref<400x256xbf16, #tpu.memory_space<vmem>>, vector<400x256xbf16>
    %c0_1 = arith.constant 0 : index
    %c0_2 = arith.constant 0 : index
    %1 = vector.load %arg2[%c0_1, %c0_2] : memref<256x128xbf16, #tpu.memory_space<vmem>>, vector<256x128xbf16>
    %cst = arith.constant dense<0.000000e+00> : vector<400x128xf32>
    %2 = tpu.matmul %0, %1, %cst {dimension_numbers = #tpu.dot_dimension_numbers<[1], [0], [0], [1], [0, 0, 1, 1], [], []>} : vector<400x256xbf16>, vector<256x128xbf16>, vector<400x128xf32> -> vector<400x128xf32>
    %c0_3 = arith.constant 0 : index
    %c0_4 = arith.constant 0 : index
    %3 = vector.load %arg3[%c0_3, %c0_4] : memref<1x128xf32, #tpu.memory_space<vmem>>, vector<1x128xf32>
    %4 = vector.broadcast %3 : vector<1x128xf32> to vector<400x128xf32>
    %5 = arith.addf %2, %4 : vector<400x128xf32>
    %cst_5 = arith.constant 0.000000e+00 : f32
    %6 = vector.broadcast %cst_5 : f32 to vector<400x128xf32>
    %7 = arith.maximumf %5, %6 : vector<400x128xf32>
    %8 = arith.truncf %7 : vector<400x128xf32> to vector<400x128xbf16>
    %c0_6 = arith.constant 0 : index
    %c0_7 = arith.constant 0 : index
    %9 = vector.load %arg4[%c0_6, %c0_7] : memref<400x128xbf16, #tpu.memory_space<vmem>>, vector<400x128xbf16>
    tpu.vector_store %arg4[%c0_6, %c0_7], %8 {strides = array<i32>} : memref<400x128xbf16, #tpu.memory_space<vmem>>, vector<400x128xbf16>,
    return
  }
  func.func @transform_0(%arg0: i32) -> (i32, i32) {
    %c0_i32 = arith.constant 0 : i32
    %c0_i32_0 = arith.constant 0 : i32
    return %arg0, %c0_i32 : i32, i32
  }
  func.func @transform_1(%arg0: i32) -> (i32, i32) {
    %c0_i32 = arith.constant 0 : i32
    %c0_i32_0 = arith.constant 0 : i32
    %c0_i32_1 = arith.constant 0 : i32
    return %c0_i32, %c0_i32_0 : i32, i32
  }
  func.func @transform_2(%arg0: i32) -> (i32, i32) {
    %c0_i32 = arith.constant 0 : i32
    %c0_i32_0 = arith.constant 0 : i32
    %c0_i32_1 = arith.constant 0 : i32
    return %c0_i32, %c0_i32_0 : i32, i32
  }
  func.func @transform_3(%arg0: i32) -> (i32, i32) {
    %c0_i32 = arith.constant 0 : i32
    %c0_i32_0 = arith.constant 0 : i32
    return %arg0, %c0_i32 : i32, i32
  }
}

module attributes {stable_mosaic.version = 11 : i64} {
  func.func @_matmul_bias_relu_kernel(%arg0: i32, %arg1: memref<88x512xbf16, #tpu.memory_space<vmem>>, %arg2: memref<512x128xbf16, #tpu.memory_space<vmem>>, %arg3: memref<1x128xf32, #tpu.memory_space<vmem>>, %arg4: memref<88x128xbf16, #tpu.memory_space<vmem>>) attributes {dimension_semantics = [#tpu.dimension_semantics<parallel>], iteration_bounds = array<i64: 2>, scalar_prefetch = 0 : i64, scratch_operands = 0 : i64, tpu.core_type = #tpu.core_type<tc>, window_params = [{transform_indices = @transform_0, window_bounds = array<i64: 88, 512>}, {pipeline_mode = #tpu.pipeline_mode<synchronous>, transform_indices = @transform_1, window_bounds = array<i64: 512, 128>}, {pipeline_mode = #tpu.pipeline_mode<synchronous>, transform_indices = @transform_2, window_bounds = array<i64: 1, 128>}, {transform_indices = @transform_3, window_bounds = array<i64: 88, 128>}]} {
    %c0 = arith.constant 0 : index
    %c0_0 = arith.constant 0 : index
    %0 = vector.load %arg1[%c0, %c0_0] : memref<88x512xbf16, #tpu.memory_space<vmem>>, vector<88x512xbf16>
    %c0_1 = arith.constant 0 : index
    %c0_2 = arith.constant 0 : index
    %1 = vector.load %arg2[%c0_1, %c0_2] : memref<512x128xbf16, #tpu.memory_space<vmem>>, vector<512x128xbf16>
    %cst = arith.constant dense<0.000000e+00> : vector<88x128xf32>
    %2 = tpu.matmul %0, %1, %cst {dimension_numbers = #tpu.dot_dimension_numbers<[1], [0], [0], [1], [0, 0, 1, 1], [], []>} : vector<88x512xbf16>, vector<512x128xbf16>, vector<88x128xf32> -> vector<88x128xf32>
    %c0_3 = arith.constant 0 : index
    %c0_4 = arith.constant 0 : index
    %3 = vector.load %arg3[%c0_3, %c0_4] : memref<1x128xf32, #tpu.memory_space<vmem>>, vector<1x128xf32>
    %4 = vector.broadcast %3 : vector<1x128xf32> to vector<88x128xf32>
    %5 = arith.addf %2, %4 : vector<88x128xf32>
    %cst_5 = arith.constant 0.000000e+00 : f32
    %6 = vector.broadcast %cst_5 : f32 to vector<88x128xf32>
    %7 = arith.maximumf %5, %6 : vector<88x128xf32>
    %8 = arith.truncf %7 : vector<88x128xf32> to vector<88x128xbf16>
    %c0_6 = arith.constant 0 : index
    %c0_7 = arith.constant 0 : index
    %9 = vector.load %arg4[%c0_6, %c0_7] : memref<88x128xbf16, #tpu.memory_space<vmem>>, vector<88x128xbf16>
    tpu.vector_store %arg4[%c0_6, %c0_7], %8 {strides = array<i32>} : memref<88x128xbf16, #tpu.memory_space<vmem>>, vector<88x128xbf16>,
    return
  }
  func.func @transform_0(%arg0: i32) -> (i32, i32) {
    %c0_i32 = arith.constant 0 : i32
    %c0_i32_0 = arith.constant 0 : i32
    return %arg0, %c0_i32 : i32, i32
  }
  func.func @transform_1(%arg0: i32) -> (i32, i32) {
    %c0_i32 = arith.constant 0 : i32
    %c0_i32_0 = arith.constant 0 : i32
    %c0_i32_1 = arith.constant 0 : i32
    return %c0_i32, %c0_i32_0 : i32, i32
  }
  func.func @transform_2(%arg0: i32) -> (i32, i32) {
    %c0_i32 = arith.constant 0 : i32
    %c0_i32_0 = arith.constant 0 : i32
    %c0_i32_1 = arith.constant 0 : i32
    return %c0_i32, %c0_i32_0 : i32, i32
  }
  func.func @transform_3(%arg0: i32) -> (i32, i32) {
    %c0_i32 = arith.constant 0 : i32
    %c0_i32_0 = arith.constant 0 : i32
    return %arg0, %c0_i32 : i32, i32
  }
}

module attributes {stable_mosaic.version = 11 : i64} {
  func.func @_matmul_bias_relu_kernel(%arg0: i32, %arg1: memref<56x576xbf16, #tpu.memory_space<vmem>>, %arg2: memref<576x128xbf16, #tpu.memory_space<vmem>>, %arg3: memref<1x128xf32, #tpu.memory_space<vmem>>, %arg4: memref<56x128xf32, #tpu.memory_space<vmem>>) attributes {dimension_semantics = [#tpu.dimension_semantics<parallel>], iteration_bounds = array<i64: 2>, scalar_prefetch = 0 : i64, scratch_operands = 0 : i64, tpu.core_type = #tpu.core_type<tc>, window_params = [{transform_indices = @transform_0, window_bounds = array<i64: 56, 576>}, {pipeline_mode = #tpu.pipeline_mode<synchronous>, transform_indices = @transform_1, window_bounds = array<i64: 576, 128>}, {pipeline_mode = #tpu.pipeline_mode<synchronous>, transform_indices = @transform_2, window_bounds = array<i64: 1, 128>}, {transform_indices = @transform_3, window_bounds = array<i64: 56, 128>}]} {
    %c0 = arith.constant 0 : index
    %c0_0 = arith.constant 0 : index
    %0 = vector.load %arg1[%c0, %c0_0] : memref<56x576xbf16, #tpu.memory_space<vmem>>, vector<56x576xbf16>
    %c0_1 = arith.constant 0 : index
    %c0_2 = arith.constant 0 : index
    %1 = vector.load %arg2[%c0_1, %c0_2] : memref<576x128xbf16, #tpu.memory_space<vmem>>, vector<576x128xbf16>
    %cst = arith.constant dense<0.000000e+00> : vector<56x128xf32>
    %2 = tpu.matmul %0, %1, %cst {dimension_numbers = #tpu.dot_dimension_numbers<[1], [0], [0], [1], [0, 0, 1, 1], [], []>} : vector<56x576xbf16>, vector<576x128xbf16>, vector<56x128xf32> -> vector<56x128xf32>
    %c0_3 = arith.constant 0 : index
    %c0_4 = arith.constant 0 : index
    %3 = vector.load %arg3[%c0_3, %c0_4] : memref<1x128xf32, #tpu.memory_space<vmem>>, vector<1x128xf32>
    %4 = vector.broadcast %3 : vector<1x128xf32> to vector<56x128xf32>
    %5 = arith.addf %2, %4 : vector<56x128xf32>
    %cst_5 = arith.constant 0.000000e+00 : f32
    %6 = vector.broadcast %cst_5 : f32 to vector<56x128xf32>
    %7 = arith.maximumf %5, %6 : vector<56x128xf32>
    %c0_6 = arith.constant 0 : index
    %c0_7 = arith.constant 0 : index
    %8 = vector.load %arg4[%c0_6, %c0_7] : memref<56x128xf32, #tpu.memory_space<vmem>>, vector<56x128xf32>
    tpu.vector_store %arg4[%c0_6, %c0_7], %7 {strides = array<i32>} : memref<56x128xf32, #tpu.memory_space<vmem>>, vector<56x128xf32>,
    return
  }
  func.func @transform_0(%arg0: i32) -> (i32, i32) {
    %c0_i32 = arith.constant 0 : i32
    %c0_i32_0 = arith.constant 0 : i32
    return %arg0, %c0_i32 : i32, i32
  }
  func.func @transform_1(%arg0: i32) -> (i32, i32) {
    %c0_i32 = arith.constant 0 : i32
    %c0_i32_0 = arith.constant 0 : i32
    %c0_i32_1 = arith.constant 0 : i32
    return %c0_i32, %c0_i32_0 : i32, i32
  }
  func.func @transform_2(%arg0: i32) -> (i32, i32) {
    %c0_i32 = arith.constant 0 : i32
    %c0_i32_0 = arith.constant 0 : i32
    %c0_i32_1 = arith.constant 0 : i32
    return %c0_i32, %c0_i32_0 : i32, i32
  }
  func.func @transform_3(%arg0: i32) -> (i32, i32) {
    %c0_i32 = arith.constant 0 : i32
    %c0_i32_0 = arith.constant 0 : i32
    return %arg0, %c0_i32 : i32, i32
  }
}

</mosaic_0001>

<bundles_post_ra>
// kernel: core_net_forward.3
= control target key start
LH: loop header
LB: loop body
LE: loop exit
PB: predicated region body
PF: predicated region fallthrough
CT: control target
= control target key end

     0   :  { %s1690_s12 = smov 0   ;;  %s1925_s0 = inlined_call_operand.vmem [shape: bf16[800,256], index: 0, kind: input, shape index: {}]   ;;  %s1926_s1 = inlined_call_operand.vmem [shape: bf16[256,128], index: 1, kind: input, shape index: {}]   ;;  %s1927_s2 = inlined_call_operand.vmem [shape: f32[1,128], index: 2, kind: input, shape index: {}]   ;;  %s1928_s3 = inlined_call_operand.vmem [shape: bf16[800,128], index: 3, kind: output, shape index: {}]  }
   0x1 LB: > { %s1202_s13 = sadd.s32 4294967295, %s1667_s12   ;;  %p1206_p0 = scmp.ge.s32.totalorder %s1667_s12, 1  ;;  %s1667_s12 = sphi %s1690_s12, %s13_s12  }
   0x2   : > { %p139_p1 = scmp.lt.s32.totalorder %s1667_s12, 3 }
   0x4   : > { %p140_p2 = pnand %p1206_p0, %p139_p1 }
   0x5   : > { %s164_s16 = smul.u32 (!%p140_p2), 50, %s1202_s13 }
   0x6   : > { %143 = sbr.rel (%p140_p2) target bundleno = 376 (0x178), region = 32 }
   0x7   : > { %p165_p3 = scmp.lt.s32.totalorder (!%p140_p2), %s164_s16, 99 }
   0xb   : > { %v1570_v0 = vld [vmem:[%s1926_s1 + $0x38] sm:$0xff]   ;;  %v1669_v1 = vmov 0   ;;  %v1571_v2 = vld [vmem:[%s1926_s1 + $0x30] sm:$0xff]   ;;  %v1572_v3 = vld [vmem:[%s1926_s1 + $0x28] sm:$0xff]   ;;  %s1930_s16 = smov (!%p165_p3, %s164_s16), 99 }
   0xc   : > { %613 = vmatprep.subr.bf16.mxu0 %v1669_v1  ;;  %1529 = vmatprep.subr.bf16.mxu1 %v1669_v1  ;;  %v1573_v4 = vld [vmem:[%s1926_s1 + $0x20] sm:$0xff]   ;;  %s1329_s23 = sshll.u32 %s1930_s16, 3  ;;  %v1574_v5 = vld [vmem:[%s1926_s1 + $0x18] sm:$0xff]   ;;  %v1575_v7 = vld [vmem:[%s1926_s1 + $0x10] sm:$0xff]   ;;  %s1209_s29 = sshll.u32 %s1930_s16, 2 }
   0xd   : > { %614 = vmatpush1.bf16.msra.mxu0 %v1570_v0  ;;  %1545 = vmatpush1.bf16.msra.mxu1 %v1570_v0  ;;  %s1727_s28 = scalar_lea.vmem %s1925_s0, %s1329_s23  ;;  %v1576_v9 = vld [vmem:[%s1926_s1 + $0x8] sm:$0xff]   ;;  %v1577_v10 = vld [vmem:[%s1926_s1] sm:$0xff]   ;;  %v1578_v11 = vld [vmem:[%s1926_s1 + $0x78] sm:$0xff]   ;;  %s1849_s4 = scalar_lea.vmem %s1928_s3, %s1209_s29 }
   0xe   : > { %615 = vmatprep.subr.bf16.mxu0 %v1669_v1  ;;  %1530 = vmatprep.subr.bf16.mxu1 %v1669_v1  ;;  %v1588_v6 = vld [vmem:[%s1727_s28 + $0x4] ss:$8 sps:$4 sm:$0xff]   ;;  %v1591_v8 = vld [vmem:[%s1727_s28 + $0xd4] ss:$8 sps:$4 sm:$0xff]   ;;  %v1586_v19 = vld [vmem:[%s1727_s28] ss:$8 sps:$4 sm:$0xff]  }
   0xf   : > { %645 = vmatprep.mubr.bf16.mxu0 %v1588_v6  ;;  %749 = vmatprep.mubr.bf16.mxu1 %v1591_v8  ;;  %v1579_v12 = vld [vmem:[%s1926_s1 + $0x70] sm:$0xff]   ;;  %v1580_v13 = vld [vmem:[%s1926_s1 + $0x68] sm:$0xff]   ;;  %v1581_v14 = vld [vmem:[%s1926_s1 + $0x60] sm:$0xff]  }
  0x10   : > { %v1582_v15 = vld [vmem:[%s1926_s1 + $0x58] sm:$0xff]   ;;  %v1583_v16 = vld [vmem:[%s1926_s1 + $0x50] sm:$0xff]   ;;  %v1584_v17 = vld [vmem:[%s1926_s1 + $0x48] sm:$0xff]  }
  0x11   : > { %616 = vmatpush1.bf16.msra.mxu0 %v1571_v2  ;;  %1546 = vmatpush1.bf16.msra.mxu1 %v1571_v2  ;;  %v1585_v18 = vld [vmem:[%s1926_s1 + $0x40] sm:$0xff]   ;;  %v1589_v20 = vld [vmem:[%s1727_s28 + $0xd0] ss:$8 sps:$4 sm:$0xff]   ;;  %v1592_v21 = vld [vmem:[%s1727_s28 + $0x14] ss:$8 sps:$4 sm:$0xff]  }
  0x12   : > { %617 = vmatprep.subr.bf16.mxu0 %v1669_v1  ;;  %1531 = vmatprep.subr.bf16.mxu1 %v1669_v1  ;;  %v1595_v22 = vld [vmem:[%s1727_s28 + $0xe4] ss:$8 sps:$4 sm:$0xff]   ;;  %v1594_v23 = vld [vmem:[%s1727_s28 + $0x10] ss:$8 sps:$4 sm:$0xff]   ;;  %v1597_v24 = vld [vmem:[%s1727_s28 + $0xe0] ss:$8 sps:$4 sm:$0xff]  }
  0x13   : > { %v1598_v25 = vld [vmem:[%s1727_s28 + $0x24] ss:$8 sps:$4 sm:$0xff]   ;;  %v1601_v26 = vld [vmem:[%s1727_s28 + $0xf4] ss:$8 sps:$4 sm:$0xff]   ;;  %v1600_v27 = vld [vmem:[%s1727_s28 + $0x20] ss:$8 sps:$4 sm:$0xff]  }
  0x14   : > { %v1603_v28 = vld [vmem:[%s1727_s28 + $0xf0] ss:$8 sps:$4 sm:$0xff]   ;;  %v1604_v29 = vld [vmem:[%s1727_s28 + $0x34] ss:$8 sps:$4 sm:$0xff]   ;;  %v1607_v30 = vld [vmem:[%s1727_s28 + $0x104] ss:$8 sps:$4 sm:$0xff]  }
  0x15   : > { %618 = vmatpush1.bf16.msra.mxu0 %v1572_v3  ;;  %1547 = vmatpush1.bf16.msra.mxu1 %v1572_v3  ;;  %v1606_v31 = vld [vmem:[%s1727_s28 + $0x30] ss:$8 sps:$4 sm:$0xff]   ;;  %v1609_v32 = vld [vmem:[%s1727_s28 + $0x100] ss:$8 sps:$4 sm:$0xff]   ;;  %v1610_v33 = vld [vmem:[%s1727_s28 + $0x44] ss:$8 sps:$4 sm:$0xff]  }
  0x16   : > { %619 = vmatprep.subr.bf16.mxu0 %v1669_v1  ;;  %1532 = vmatprep.subr.bf16.mxu1 %v1669_v1  ;;  %v1613_v34 = vld [vmem:[%s1727_s28 + $0x114] ss:$8 sps:$4 sm:$0xff]   ;;  %v1612_v35 = vld [vmem:[%s1727_s28 + $0x40] ss:$8 sps:$4 sm:$0xff]   ;;  %v1615_v36 = vld [vmem:[%s1727_s28 + $0x110] ss:$8 sps:$4 sm:$0xff]  }
  0x17   : > { %v1616_v37 = vld [vmem:[%s1727_s28 + $0x54] ss:$8 sps:$4 sm:$0xff]   ;;  %v1619_v38 = vld [vmem:[%s1727_s28 + $0x124] ss:$8 sps:$4 sm:$0xff]   ;;  %v1618_v39 = vld [vmem:[%s1727_s28 + $0x50] ss:$8 sps:$4 sm:$0xff]  }
  0x18   : > { %v1621_v40 = vld [vmem:[%s1727_s28 + $0x120] ss:$8 sps:$4 sm:$0xff]   ;;  %v1622_v41 = vld [vmem:[%s1727_s28 + $0x64] ss:$8 sps:$4 sm:$0xff]   ;;  %v1625_v42 = vld [vmem:[%s1727_s28 + $0x134] ss:$8 sps:$4 sm:$0xff]  }
  0x19   : > { %620 = vmatpush1.bf16.msra.mxu0 %v1573_v4  ;;  %1548 = vmatpush1.bf16.msra.mxu1 %v1573_v4  ;;  %v1624_v43 = vld [vmem:[%s1727_s28 + $0x60] ss:$8 sps:$4 sm:$0xff]   ;;  %v1627_v44 = vld [vmem:[%s1727_s28 + $0x130] ss:$8 sps:$4 sm:$0xff]   ;;  %v1628_v45 = vld [vmem:[%s1727_s28 + $0x74] ss:$8 sps:$4 sm:$0xff]  }
  0x1a   : > { %621 = vmatprep.subr.bf16.mxu0 %v1669_v1  ;;  %1533 = vmatprep.subr.bf16.mxu1 %v1669_v1  ;;  %v1631_v46 = vld [vmem:[%s1727_s28 + $0x144] ss:$8 sps:$4 sm:$0xff]   ;;  %v1630_v47 = vld [vmem:[%s1727_s28 + $0x70] ss:$8 sps:$4 sm:$0xff]   ;;  %v1633_v48 = vld [vmem:[%s1727_s28 + $0x140] ss:$8 sps:$4 sm:$0xff]  }
  0x1b   : > { %v1634_v49 = vld [vmem:[%s1727_s28 + $0x84] ss:$8 sps:$4 sm:$0xff]   ;;  %v1637_v50 = vld [vmem:[%s1727_s28 + $0x154] ss:$8 sps:$4 sm:$0xff]   ;;  %v1636_v51 = vld [vmem:[%s1727_s28 + $0x80] ss:$8 sps:$4 sm:$0xff]  }
  0x1c   : > { %v1639_v52 = vld [vmem:[%s1727_s28 + $0x150] ss:$8 sps:$4 sm:$0xff]   ;;  %v1640_v53 = vld [vmem:[%s1727_s28 + $0x94] ss:$8 sps:$4 sm:$0xff]   ;;  %v1643_v54 = vld [vmem:[%s1727_s28 + $0x164] ss:$8 sps:$4 sm:$0xff]  }
  0x1d   : > { %622 = vmatpush1.bf16.msra.mxu0 %v1574_v5  ;;  %1549 = vmatpush1.bf16.msra.mxu1 %v1574_v5  ;;  %v1642_v55 = vld [vmem:[%s1727_s28 + $0x90] ss:$8 sps:$4 sm:$0xff]   ;;  %v1645_v56 = vld [vmem:[%s1727_s28 + $0x160] ss:$8 sps:$4 sm:$0xff]   ;;  %v1646_v57 = vld [vmem:[%s1727_s28 + $0xa4] ss:$8 sps:$4 sm:$0xff]  }
  0x1e   : > { %623 = vmatprep.subr.bf16.mxu0 %v1669_v1  ;;  %1534 = vmatprep.subr.bf16.mxu1 %v1669_v1  ;;  %v1649_v58 = vld [vmem:[%s1727_s28 + $0x174] ss:$8 sps:$4 sm:$0xff]   ;;  %v1648_v59 = vld [vmem:[%s1727_s28 + $0xa0] ss:$8 sps:$4 sm:$0xff]   ;;  %v1651_v60 = vld [vmem:[%s1727_s28 + $0x170] ss:$8 sps:$4 sm:$0xff]  }
  0x1f   : > { %v1652_v61 = vld [vmem:[%s1727_s28 + $0xb4] ss:$8 sps:$4 sm:$0xff]   ;;  %v1655_v62 = vld [vmem:[%s1727_s28 + $0x184] ss:$8 sps:$4 sm:$0xff]   ;;  %v1654_v63 = vld [vmem:[%s1727_s28 + $0xb0] ss:$8 sps:$4 sm:$0xff]  }
  0x20   : > { %v1657_v0 = vld [vmem:[%s1727_s28 + $0x180] ss:$8 sps:$4 sm:$0xff]  }
  0x21   : > { %624 = vmatpush1.bf16.msra.mxu0 %v1575_v7  ;;  %1550 = vmatpush1.bf16.msra.mxu1 %v1575_v7  ;;  %v1660_v2 = vld [vmem:[%s1727_s28 + $0xc0] ss:$8 sps:$4 sm:$0xff]  }
  0x22   : > { %625 = vmatprep.subr.bf16.mxu0 %v1669_v1  ;;  %1535 = vmatprep.subr.bf16.mxu1 %v1669_v1  ;;  %v1839_v3 = vld [vmem:[%s1927_s2] ss:$0 sm:$0xff] }
  0x25   : > { %626 = vmatpush1.bf16.msra.mxu0 %v1576_v9  ;;  %1551 = vmatpush1.bf16.msra.mxu1 %v1576_v9 }
  0x26   : > { %627 = vmatprep.subr.bf16.mxu0 %v1669_v1  ;;  %1536 = vmatprep.subr.bf16.mxu1 %v1669_v1 }
  0x29   : > { %628 = vmatpush1.bf16.msra.mxu0 %v1577_v10  ;;  %1552 = vmatpush1.bf16.msra.mxu1 %v1577_v10 }
  0x2a   : > { %629 = vmatprep.subr.bf16.mxu0 %v1669_v1  ;;  %1537 = vmatprep.subr.bf16.mxu1 %v1669_v1 }
  0x2d   : > { %630 = vmatpush2.bf16.msra.mxu0 %v1578_v11  ;;  %1553 = vmatpush2.bf16.msra.mxu1 %v1578_v11 }
  0x2e   : > { %631 = vmatprep.subr.bf16.mxu0 %v1669_v1  ;;  %1538 = vmatprep.subr.bf16.mxu1 %v1669_v1 }
  0x31   : > { %632 = vmatpush2.bf16.msra.mxu0 %v1579_v12  ;;  %1554 = vmatpush2.bf16.msra.mxu1 %v1579_v12 }
  0x32   : > { %633 = vmatprep.subr.bf16.mxu0 %v1669_v1  ;;  %1539 = vmatprep.subr.bf16.mxu1 %v1669_v1 }
  0x35   : > { %634 = vmatpush2.bf16.msra.mxu0 %v1580_v13  ;;  %1555 = vmatpush2.bf16.msra.mxu1 %v1580_v13 }
  0x36   : > { %635 = vmatprep.subr.bf16.mxu0 %v1669_v1  ;;  %1540 = vmatprep.subr.bf16.mxu1 %v1669_v1 }
  0x39   : > { %636 = vmatpush2.bf16.msra.mxu0 %v1581_v14  ;;  %1556 = vmatpush2.bf16.msra.mxu1 %v1581_v14 }
  0x3a   : > { %637 = vmatprep.subr.bf16.mxu0 %v1669_v1  ;;  %1541 = vmatprep.subr.bf16.mxu1 %v1669_v1 }
  0x3d   : > { %638 = vmatpush2.bf16.msra.mxu0 %v1582_v15  ;;  %1557 = vmatpush2.bf16.msra.mxu1 %v1582_v15 }
  0x3e   : > { %639 = vmatprep.subr.bf16.mxu0 %v1669_v1  ;;  %1542 = vmatprep.subr.bf16.mxu1 %v1669_v1 }
  0x41   : > { %640 = vmatpush2.bf16.msra.mxu0 %v1583_v16  ;;  %1558 = vmatpush2.bf16.msra.mxu1 %v1583_v16 }
  0x42   : > { %641 = vmatprep.subr.bf16.mxu0 %v1669_v1  ;;  %1543 = vmatprep.subr.bf16.mxu1 %v1669_v1 }
  0x45   : > { %642 = vmatpush2.bf16.msra.mxu0 %v1584_v17  ;;  %1559 = vmatpush2.bf16.msra.mxu1 %v1584_v17 }
  0x46   : > { %643 = vmatprep.subr.bf16.mxu0 %v1669_v1  ;;  %1544 = vmatprep.subr.bf16.mxu1 %v1669_v1  ;;  %v1658_v1 = vld [vmem:[%s1727_s28 + $0xc4] ss:$8 sps:$4 sm:$0xff]  }
  0x49   : > { %644 = vmatpush2.bf16.msra.mxu0 %v1585_v18  ;;  %1560 = vmatpush2.bf16.msra.mxu1 %v1585_v18 }
  0x4c   : > { %646 = vmatmul.mubr.bf16.vlgmr.msra.gmra.mxu0 %v1586_v19  ;;  %750 = vmatmul.mubr.bf16.vlgmr.msra.gmra.mxu1 %v1589_v20 }
  0x4d   : > { %653 = vmatprep.mubr.bf16.mxu0 %v1592_v21  ;;  %757 = vmatprep.mubr.bf16.mxu1 %v1595_v22 }
  0x54   : > { %654 = vmatmul.mubr.bf16.gmra.mxu0 %v1594_v23  ;;  %758 = vmatmul.mubr.bf16.gmra.mxu1 %v1597_v24 }
  0x55   : > { %661 = vmatprep.mubr.bf16.mxu0 %v1598_v25  ;;  %765 = vmatprep.mubr.bf16.mxu1 %v1601_v26 }
  0x5c   : > { %662 = vmatmul.mubr.bf16.gmra.mxu0 %v1600_v27  ;;  %766 = vmatmul.mubr.bf16.gmra.mxu1 %v1603_v28 }
  0x5d   : > { %669 = vmatprep.mubr.bf16.mxu0 %v1604_v29  ;;  %773 = vmatprep.mubr.bf16.mxu1 %v1607_v30 }
  0x64   : > { %670 = vmatmul.mubr.bf16.gmra.mxu0 %v1606_v31  ;;  %774 = vmatmul.mubr.bf16.gmra.mxu1 %v1609_v32 }
  0x65   : > { %677 = vmatprep.mubr.bf16.mxu0 %v1610_v33  ;;  %781 = vmatprep.mubr.bf16.mxu1 %v1613_v34 }
  0x6c   : > { %678 = vmatmul.mubr.bf16.gmra.mxu0 %v1612_v35  ;;  %782 = vmatmul.mubr.bf16.gmra.mxu1 %v1615_v36 }
  0x6d   : > { %685 = vmatprep.mubr.bf16.mxu0 %v1616_v37  ;;  %789 = vmatprep.mubr.bf16.mxu1 %v1619_v38 }
  0x74   : > { %686 = vmatmul.mubr.bf16.gmra.mxu0 %v1618_v39  ;;  %790 = vmatmul.mubr.bf16.gmra.mxu1 %v1621_v40 }
  0x75   : > { %693 = vmatprep.mubr.bf16.mxu0 %v1622_v41  ;;  %797 = vmatprep.mubr.bf16.mxu1 %v1625_v42 }
  0x7c   : > { %694 = vmatmul.mubr.bf16.gmra.mxu0 %v1624_v43  ;;  %798 = vmatmul.mubr.bf16.gmra.mxu1 %v1627_v44 }
  0x7d   : > { %701 = vmatprep.mubr.bf16.mxu0 %v1628_v45  ;;  %805 = vmatprep.mubr.bf16.mxu1 %v1631_v46 }
  0x84   : > { %702 = vmatmul.mubr.bf16.gmra.mxu0 %v1630_v47  ;;  %806 = vmatmul.mubr.bf16.gmra.mxu1 %v1633_v48 }
  0x85   : > { %709 = vmatprep.mubr.bf16.mxu0 %v1634_v49  ;;  %813 = vmatprep.mubr.bf16.mxu1 %v1637_v50 }
  0x8c   : > { %710 = vmatmul.mubr.bf16.gmra.mxu0 %v1636_v51  ;;  %814 = vmatmul.mubr.bf16.gmra.mxu1 %v1639_v52 }
  0x8d   : > { %717 = vmatprep.mubr.bf16.mxu0 %v1640_v53  ;;  %821 = vmatprep.mubr.bf16.mxu1 %v1643_v54 }
  0x94   : > { %718 = vmatmul.mubr.bf16.gmra.mxu0 %v1642_v55  ;;  %822 = vmatmul.mubr.bf16.gmra.mxu1 %v1645_v56 }
  0x95   : > { %725 = vmatprep.mubr.bf16.mxu0 %v1646_v57  ;;  %829 = vmatprep.mubr.bf16.mxu1 %v1649_v58 }
  0x9c   : > { %726 = vmatmul.mubr.bf16.gmra.mxu0 %v1648_v59  ;;  %830 = vmatmul.mubr.bf16.gmra.mxu1 %v1651_v60 }
  0x9d   : > { %733 = vmatprep.mubr.bf16.mxu0 %v1652_v61  ;;  %837 = vmatprep.mubr.bf16.mxu1 %v1655_v62 }
  0xa4   : > { %734 = vmatmul.mubr.bf16.gmra.mxu0 %v1654_v63  ;;  %838 = vmatmul.mubr.bf16.gmra.mxu1 %v1657_v0 }
  0xa5   : > { %741 = vmatprep.mubr.bf16.mxu0 %v1658_v1 }
  0xac   : > { %742 = vmatmul.mubr.bf16.gmra.mxu0 %v1660_v2 }
 0x10c   : > { %v647_v4 = vpop.f32.mrf.mxu0  ;;  %v751_v5 = vpop.f32.mrf.mxu1 }
 0x10d   : > { %v752_v6 = vadd.f32 %v1839_v3, %v751_v5  ;;  %v648_v9 = vadd.f32 %v1839_v3, %v647_v4 }
 0x10e   : > { %v649_v7 = vpop.f32.mrf.mxu0  ;;  %v753_v8 = vpop.f32.mrf.mxu1 }
 0x10f   : > { %v872_v12 = vmax.f32 %v752_v6, 0.0  ;;  %v846_v17 = vmax.f32 %v648_v9, 0.0 }
 0x110   : > { %v650_v10 = vpop.f32.mrf.mxu0  ;;  %v754_v11 = vpop.f32.mrf.mxu1 }
 0x111   : > { %v651_v13 = vadd.f32 %v1839_v3, %v650_v10  ;;  %v755_v14 = vadd.f32 %v1839_v3, %v754_v11 }
 0x112   : > { %v652_v15 = vpop.f32.mrf.mxu0  ;;  %v756_v16 = vpop.f32.mrf.mxu1 }
 0x113   : > { %v847_v18 = vmax.f32 %v651_v13, 0.0  ;;  %v873_v19 = vmax.f32 %v755_v14, 0.0 }
 0x114   : > { %v655_v20 = vpop.f32.mrf.mxu0  ;;  %v759_v21 = vpop.f32.mrf.mxu1 }
 0x115   : > { %v1383_v22 = vpack.c.bf16 %v847_v18, %v846_v17  ;;  %v1448_v23 = vpack.c.bf16 %v873_v19, %v872_v12  ;;  %v760_v24 = vadd.f32 %v1839_v3, %v759_v21  ;;  %v656_v27 = vadd.f32 %v1839_v3, %v655_v20 }
 0x116   : > { %v657_v25 = vpop.f32.mrf.mxu0  ;;  %v761_v26 = vpop.f32.mrf.mxu1 }
 0x117   : > { %1384 = vst [vmem:[%s1849_s4] sm:$0xff] %v1383_v22   ;;  %1517 = vst [vmem:[%s1849_s4 + $0x68] sm:$0xff] %v1448_v23   ;;  %v874_v30 = vmax.f32 %v760_v24, 0.0  ;;  %v848_v35 = vmax.f32 %v656_v27, 0.0 }
 0x118   : > { %v658_v28 = vpop.f32.mrf.mxu0  ;;  %v762_v29 = vpop.f32.mrf.mxu1 }
 0x119   : > { %v659_v31 = vadd.f32 %v1839_v3, %v658_v28  ;;  %v763_v32 = vadd.f32 %v1839_v3, %v762_v29 }
 0x11a   : > { %v660_v33 = vpop.f32.mrf.mxu0  ;;  %v764_v34 = vpop.f32.mrf.mxu1 }
 0x11b   : > { %v849_v36 = vmax.f32 %v659_v31, 0.0  ;;  %v875_v37 = vmax.f32 %v763_v32, 0.0 }
 0x11c   : > { %v663_v38 = vpop.f32.mrf.mxu0  ;;  %v767_v39 = vpop.f32.mrf.mxu1 }
 0x11d   : > { %v1388_v40 = vpack.c.bf16 %v849_v36, %v848_v35  ;;  %v1453_v41 = vpack.c.bf16 %v875_v37, %v874_v30  ;;  %v768_v42 = vadd.f32 %v1839_v3, %v767_v39  ;;  %v664_v45 = vadd.f32 %v1839_v3, %v663_v38 }
 0x11e   : > { %v665_v43 = vpop.f32.mrf.mxu0  ;;  %v769_v44 = vpop.f32.mrf.mxu1 }
 0x11f   : > { %1505 = vst [vmem:[%s1849_s4 + $0x8] sm:$0xff] %v1388_v40   ;;  %1518 = vst [vmem:[%s1849_s4 + $0x70] sm:$0xff] %v1453_v41   ;;  %v876_v48 = vmax.f32 %v768_v42, 0.0  ;;  %v850_v53 = vmax.f32 %v664_v45, 0.0 }
 0x120   : > { %v666_v46 = vpop.f32.mrf.mxu0  ;;  %v770_v47 = vpop.f32.mrf.mxu1 }
 0x121   : > { %v667_v49 = vadd.f32 %v1839_v3, %v666_v46  ;;  %v771_v50 = vadd.f32 %v1839_v3, %v770_v47 }
 0x122   : > { %v668_v51 = vpop.f32.mrf.mxu0  ;;  %v772_v52 = vpop.f32.mrf.mxu1 }
 0x123   : > { %v851_v54 = vmax.f32 %v667_v49, 0.0  ;;  %v877_v55 = vmax.f32 %v771_v50, 0.0 }
 0x124   : > { %v671_v56 = vpop.f32.mrf.mxu0  ;;  %v775_v57 = vpop.f32.mrf.mxu1 }
 0x125   : > { %v1393_v58 = vpack.c.bf16 %v851_v54, %v850_v53  ;;  %v1458_v59 = vpack.c.bf16 %v877_v55, %v876_v48  ;;  %v776_v60 = vadd.f32 %v1839_v3, %v775_v57  ;;  %v672_v63 = vadd.f32 %v1839_v3, %v671_v56 }
 0x126   : > { %v673_v61 = vpop.f32.mrf.mxu0  ;;  %v777_v62 = vpop.f32.mrf.mxu1 }
 0x127   : > { %1506 = vst [vmem:[%s1849_s4 + $0x10] sm:$0xff] %v1393_v58   ;;  %1519 = vst [vmem:[%s1849_s4 + $0x78] sm:$0xff] %v1458_v59   ;;  %v878_v2 = vmax.f32 %v776_v60, 0.0  ;;  %v852_v8 = vmax.f32 %v672_v63, 0.0 }
 0x128   : > { %v674_v0 = vpop.f32.mrf.mxu0  ;;  %v778_v1 = vpop.f32.mrf.mxu1 }
 0x129   : > { %v675_v4 = vadd.f32 %v1839_v3, %v674_v0  ;;  %v779_v5 = vadd.f32 %v1839_v3, %v778_v1 }
 0x12a   : > { %v676_v6 = vpop.f32.mrf.mxu0  ;;  %v780_v7 = vpop.f32.mrf.mxu1 }
 0x12b   : > { %v853_v9 = vmax.f32 %v675_v4, 0.0  ;;  %v879_v10 = vmax.f32 %v779_v5, 0.0 }
 0x12c   : > { %v679_v11 = vpop.f32.mrf.mxu0  ;;  %v783_v12 = vpop.f32.mrf.mxu1 }
 0x12d   : > { %v1398_v13 = vpack.c.bf16 %v853_v9, %v852_v8  ;;  %v1463_v14 = vpack.c.bf16 %v879_v10, %v878_v2  ;;  %v784_v15 = vadd.f32 %v1839_v3, %v783_v12  ;;  %v680_v18 = vadd.f32 %v1839_v3, %v679_v11 }
 0x12e   : > { %v681_v16 = vpop.f32.mrf.mxu0  ;;  %v785_v17 = vpop.f32.mrf.mxu1 }
 0x12f   : > { %1507 = vst [vmem:[%s1849_s4 + $0x18] sm:$0xff] %v1398_v13   ;;  %1520 = vst [vmem:[%s1849_s4 + $0x80] sm:$0xff] %v1463_v14   ;;  %v880_v21 = vmax.f32 %v784_v15, 0.0  ;;  %v854_v26 = vmax.f32 %v680_v18, 0.0 }
 0x130   : > { %v682_v19 = vpop.f32.mrf.mxu0  ;;  %v786_v20 = vpop.f32.mrf.mxu1 }
 0x131   : > { %v683_v22 = vadd.f32 %v1839_v3, %v682_v19  ;;  %v787_v23 = vadd.f32 %v1839_v3, %v786_v20 }
 0x132   : > { %v684_v24 = vpop.f32.mrf.mxu0  ;;  %v788_v25 = vpop.f32.mrf.mxu1 }
 0x133   : > { %v855_v27 = vmax.f32 %v683_v22, 0.0  ;;  %v881_v28 = vmax.f32 %v787_v23, 0.0 }
 0x134   : > { %v687_v29 = vpop.f32.mrf.mxu0  ;;  %v791_v30 = vpop.f32.mrf.mxu1 }
 0x135   : > { %v1403_v31 = vpack.c.bf16 %v855_v27, %v854_v26  ;;  %v1468_v32 = vpack.c.bf16 %v881_v28, %v880_v21  ;;  %v792_v33 = vadd.f32 %v1839_v3, %v791_v30  ;;  %v688_v36 = vadd.f32 %v1839_v3, %v687_v29 }
 0x136   : > { %v689_v34 = vpop.f32.mrf.mxu0  ;;  %v793_v35 = vpop.f32.mrf.mxu1 }
 0x137   : > { %1508 = vst [vmem:[%s1849_s4 + $0x20] sm:$0xff] %v1403_v31   ;;  %1521 = vst [vmem:[%s1849_s4 + $0x88] sm:$0xff] %v1468_v32   ;;  %v882_v39 = vmax.f32 %v792_v33, 0.0  ;;  %v856_v44 = vmax.f32 %v688_v36, 0.0 }
 0x138   : > { %v690_v37 = vpop.f32.mrf.mxu0  ;;  %v794_v38 = vpop.f32.mrf.mxu1 }
 0x139   : > { %v691_v40 = vadd.f32 %v1839_v3, %v690_v37  ;;  %v795_v41 = vadd.f32 %v1839_v3, %v794_v38 }
 0x13a   : > { %v692_v42 = vpop.f32.mrf.mxu0  ;;  %v796_v43 = vpop.f32.mrf.mxu1 }
 0x13b   : > { %v857_v45 = vmax.f32 %v691_v40, 0.0  ;;  %v883_v46 = vmax.f32 %v795_v41, 0.0 }
 0x13c   : > { %v695_v47 = vpop.f32.mrf.mxu0  ;;  %v799_v48 = vpop.f32.mrf.mxu1 }
 0x13d   : > { %v1408_v49 = vpack.c.bf16 %v857_v45, %v856_v44  ;;  %v1473_v50 = vpack.c.bf16 %v883_v46, %v882_v39  ;;  %v800_v51 = vadd.f32 %v1839_v3, %v799_v48  ;;  %v696_v54 = vadd.f32 %v1839_v3, %v695_v47 }
 0x13e   : > { %v697_v52 = vpop.f32.mrf.mxu0  ;;  %v801_v53 = vpop.f32.mrf.mxu1 }
 0x13f   : > { %1509 = vst [vmem:[%s1849_s4 + $0x28] sm:$0xff] %v1408_v49   ;;  %1522 = vst [vmem:[%s1849_s4 + $0x90] sm:$0xff] %v1473_v50   ;;  %v884_v57 = vmax.f32 %v800_v51, 0.0  ;;  %v858_v62 = vmax.f32 %v696_v54, 0.0 }
 0x140   : > { %v698_v55 = vpop.f32.mrf.mxu0  ;;  %v802_v56 = vpop.f32.mrf.mxu1 }
 0x141   : > { %v699_v58 = vadd.f32 %v1839_v3, %v698_v55  ;;  %v803_v59 = vadd.f32 %v1839_v3, %v802_v56 }
 0x142   : > { %v700_v60 = vpop.f32.mrf.mxu0  ;;  %v804_v61 = vpop.f32.mrf.mxu1 }
 0x143   : > { %v859_v63 = vmax.f32 %v699_v58, 0.0  ;;  %v885_v0 = vmax.f32 %v803_v59, 0.0 }
 0x144   : > { %v703_v1 = vpop.f32.mrf.mxu0  ;;  %v807_v2 = vpop.f32.mrf.mxu1 }
 0x145   : > { %v1413_v4 = vpack.c.bf16 %v859_v63, %v858_v62  ;;  %v1478_v5 = vpack.c.bf16 %v885_v0, %v884_v57  ;;  %v808_v6 = vadd.f32 %v1839_v3, %v807_v2  ;;  %v704_v9 = vadd.f32 %v1839_v3, %v703_v1 }
 0x146   : > { %v705_v7 = vpop.f32.mrf.mxu0  ;;  %v809_v8 = vpop.f32.mrf.mxu1 }
 0x147   : > { %1510 = vst [vmem:[%s1849_s4 + $0x30] sm:$0xff] %v1413_v4   ;;  %1523 = vst [vmem:[%s1849_s4 + $0x98] sm:$0xff] %v1478_v5   ;;  %v886_v12 = vmax.f32 %v808_v6, 0.0  ;;  %v860_v17 = vmax.f32 %v704_v9, 0.0 }
 0x148   : > { %v706_v10 = vpop.f32.mrf.mxu0  ;;  %v810_v11 = vpop.f32.mrf.mxu1 }
 0x149   : > { %v707_v13 = vadd.f32 %v1839_v3, %v706_v10  ;;  %v811_v14 = vadd.f32 %v1839_v3, %v810_v11 }
 0x14a   : > { %v708_v15 = vpop.f32.mrf.mxu0  ;;  %v812_v16 = vpop.f32.mrf.mxu1 }
 0x14b   : > { %v861_v18 = vmax.f32 %v707_v13, 0.0  ;;  %v887_v19 = vmax.f32 %v811_v14, 0.0 }
 0x14c   : > { %v711_v20 = vpop.f32.mrf.mxu0  ;;  %v815_v21 = vpop.f32.mrf.mxu1 }
 0x14d   : > { %v1418_v22 = vpack.c.bf16 %v861_v18, %v860_v17  ;;  %v1483_v23 = vpack.c.bf16 %v887_v19, %v886_v12  ;;  %v816_v24 = vadd.f32 %v1839_v3, %v815_v21  ;;  %v712_v27 = vadd.f32 %v1839_v3, %v711_v20 }
 0x14e   : > { %v713_v25 = vpop.f32.mrf.mxu0  ;;  %v817_v26 = vpop.f32.mrf.mxu1 }
 0x14f   : > { %1511 = vst [vmem:[%s1849_s4 + $0x38] sm:$0xff] %v1418_v22   ;;  %1524 = vst [vmem:[%s1849_s4 + $0xa0] sm:$0xff] %v1483_v23   ;;  %v888_v30 = vmax.f32 %v816_v24, 0.0  ;;  %v862_v35 = vmax.f32 %v712_v27, 0.0 }
 0x150   : > { %v714_v28 = vpop.f32.mrf.mxu0  ;;  %v818_v29 = vpop.f32.mrf.mxu1 }
 0x151   : > { %v715_v31 = vadd.f32 %v1839_v3, %v714_v28  ;;  %v819_v32 = vadd.f32 %v1839_v3, %v818_v29 }
 0x152   : > { %v716_v33 = vpop.f32.mrf.mxu0  ;;  %v820_v34 = vpop.f32.mrf.mxu1 }
 0x153   : > { %v863_v36 = vmax.f32 %v715_v31, 0.0  ;;  %v889_v37 = vmax.f32 %v819_v32, 0.0 }
 0x154   : > { %v719_v38 = vpop.f32.mrf.mxu0  ;;  %v823_v39 = vpop.f32.mrf.mxu1 }
 0x155   : > { %v1423_v40 = vpack.c.bf16 %v863_v36, %v862_v35  ;;  %v1488_v41 = vpack.c.bf16 %v889_v37, %v888_v30  ;;  %v824_v42 = vadd.f32 %v1839_v3, %v823_v39  ;;  %v720_v45 = vadd.f32 %v1839_v3, %v719_v38 }
 0x156   : > { %v721_v43 = vpop.f32.mrf.mxu0  ;;  %v825_v44 = vpop.f32.mrf.mxu1 }
 0x157   : > { %1512 = vst [vmem:[%s1849_s4 + $0x40] sm:$0xff] %v1423_v40   ;;  %1525 = vst [vmem:[%s1849_s4 + $0xa8] sm:$0xff] %v1488_v41   ;;  %v890_v48 = vmax.f32 %v824_v42, 0.0  ;;  %v864_v53 = vmax.f32 %v720_v45, 0.0 }
 0x158   : > { %v722_v46 = vpop.f32.mrf.mxu0  ;;  %v826_v47 = vpop.f32.mrf.mxu1 }
 0x159   : > { %v723_v49 = vadd.f32 %v1839_v3, %v722_v46  ;;  %v827_v50 = vadd.f32 %v1839_v3, %v826_v47 }
 0x15a   : > { %v724_v51 = vpop.f32.mrf.mxu0  ;;  %v828_v52 = vpop.f32.mrf.mxu1 }
 0x15b   : > { %v865_v54 = vmax.f32 %v723_v49, 0.0  ;;  %v891_v55 = vmax.f32 %v827_v50, 0.0 }
 0x15c   : > { %v727_v56 = vpop.f32.mrf.mxu0  ;;  %v831_v57 = vpop.f32.mrf.mxu1 }
 0x15d   : > { %v1428_v58 = vpack.c.bf16 %v865_v54, %v864_v53  ;;  %v1493_v59 = vpack.c.bf16 %v891_v55, %v890_v48  ;;  %v832_v60 = vadd.f32 %v1839_v3, %v831_v57  ;;  %v728_v63 = vadd.f32 %v1839_v3, %v727_v56 }
 0x15e   : > { %v729_v61 = vpop.f32.mrf.mxu0  ;;  %v833_v62 = vpop.f32.mrf.mxu1 }
 0x15f   : > { %1513 = vst [vmem:[%s1849_s4 + $0x48] sm:$0xff] %v1428_v58   ;;  %1526 = vst [vmem:[%s1849_s4 + $0xb0] sm:$0xff] %v1493_v59   ;;  %v892_v2 = vmax.f32 %v832_v60, 0.0  ;;  %v866_v8 = vmax.f32 %v728_v63, 0.0 }
 0x160   : > { %v730_v0 = vpop.f32.mrf.mxu0  ;;  %v834_v1 = vpop.f32.mrf.mxu1 }
 0x161   : > { %v731_v4 = vadd.f32 %v1839_v3, %v730_v0  ;;  %v835_v5 = vadd.f32 %v1839_v3, %v834_v1 }
 0x162   : > { %v732_v6 = vpop.f32.mrf.mxu0  ;;  %v836_v7 = vpop.f32.mrf.mxu1 }
 0x163   : > { %v867_v9 = vmax.f32 %v731_v4, 0.0  ;;  %v893_v10 = vmax.f32 %v835_v5, 0.0 }
 0x164   : > { %v735_v11 = vpop.f32.mrf.mxu0  ;;  %v839_v12 = vpop.f32.mrf.mxu1 }
 0x165   : > { %v1433_v13 = vpack.c.bf16 %v867_v9, %v866_v8  ;;  %v1498_v14 = vpack.c.bf16 %v893_v10, %v892_v2  ;;  %v840_v15 = vadd.f32 %v1839_v3, %v839_v12  ;;  %v736_v18 = vadd.f32 %v1839_v3, %v735_v11 }
 0x166   : > { %v737_v16 = vpop.f32.mrf.mxu0  ;;  %v841_v17 = vpop.f32.mrf.mxu1 }
 0x167   : > { %1514 = vst [vmem:[%s1849_s4 + $0x50] sm:$0xff] %v1433_v13   ;;  %1527 = vst [vmem:[%s1849_s4 + $0xb8] sm:$0xff] %v1498_v14   ;;  %v894_v21 = vmax.f32 %v840_v15, 0.0  ;;  %v868_v26 = vmax.f32 %v736_v18, 0.0 }
 0x168   : > { %v738_v19 = vpop.f32.mrf.mxu0  ;;  %v842_v20 = vpop.f32.mrf.mxu1 }
 0x169   : > { %v739_v22 = vadd.f32 %v1839_v3, %v738_v19  ;;  %v843_v23 = vadd.f32 %v1839_v3, %v842_v20 }
 0x16a   : > { %v740_v24 = vpop.f32.mrf.mxu0  ;;  %v844_v25 = vpop.f32.mrf.mxu1 }
 0x16b   : > { %v869_v27 = vmax.f32 %v739_v22, 0.0  ;;  %v895_v28 = vmax.f32 %v843_v23, 0.0 }
 0x16c   : > { %v743_v29 = vpop.f32.mrf.mxu0 }
 0x16d   : > { %v1438_v30 = vpack.c.bf16 %v869_v27, %v868_v26  ;;  %v1503_v31 = vpack.c.bf16 %v895_v28, %v894_v21  ;;  %v744_v33 = vadd.f32 %v1839_v3, %v743_v29 }
 0x16e   : > { %v745_v32 = vpop.f32.mrf.mxu0 }
 0x16f   : > { %1515 = vst [vmem:[%s1849_s4 + $0x58] sm:$0xff] %v1438_v30   ;;  %1528 = vst [vmem:[%s1849_s4 + $0xc0] sm:$0xff] %v1503_v31   ;;  %v870_v37 = vmax.f32 %v744_v33, 0.0 }
 0x170   : > { %v746_v34 = vpop.f32.mrf.mxu0 }
 0x171   : > { %v747_v35 = vadd.f32 %v1839_v3, %v746_v34 }
 0x172   : > { %v748_v36 = vpop.f32.mrf.mxu0 }
 0x173   : > { %v871_v38 = vmax.f32 %v747_v35, 0.0 }
 0x175   : > { %v1443_v39 = vpack.c.bf16 %v871_v38, %v870_v37 }
 0x177   : > { %1516 = vst [vmem:[%s1849_s4 + $0x60] sm:$0xff] %v1443_v39  }
 0x178 PF: > { %s13_s12 = sadd.s32 1, %s1667_s12  }
 0x179   : > { %p10_p4 = scmp.ge.s32.totalorder %s13_s12, 4  }
 0x17b   :  { %12 = sbr.rel (!%p10_p4) target bundleno = 1 (0x1), region = 62 }

// kernel: core_net_forward.4
= control target key start
LH: loop header
LB: loop body
LE: loop exit
PB: predicated region body
PF: predicated region fallthrough
CT: control target
= control target key end

     0   :  { %s1585_s12 = smov 0   ;;  %s1587_s13 = smov 0   ;;  %s1826_s0 = inlined_call_operand.vmem [shape: bf16[162,512], index: 0, kind: input, shape index: {}]   ;;  %s1827_s1 = inlined_call_operand.vmem [shape: bf16[512,128], index: 1, kind: input, shape index: {}]   ;;  %s1828_s2 = inlined_call_operand.vmem [shape: f32[1,128], index: 2, kind: input, shape index: {}]   ;;  %s1829_s3 = inlined_call_operand.vmem [shape: bf16[162,128], index: 3, kind: output, shape index: {}]  }
   0x1   :  { %s1589_s14 = smov 0  }
   0x2 LB: > { %s1598_s15 = sadd.s32 4294967295, %s1531_s14   ;;  %s1600_s16 = sadd.s32 1, %s1531_s14   ;;  %s1531_s14 = sphi %s1589_s14, %s1836_s14   ;;  %s1527_s13 = sphi %s1587_s13, %s1835_s13   ;;  %s1523_s12 = sphi %s1585_s12, %s1834_s12  }
   0x3   : > { %s85_s17 = ssub.s32 %s1531_s14, %s1600_s16  ;;  %s88_s18 = sadd.s32 1, %s1527_s13 }
   0x4   : > { %p86_p0 = scmp.eq.s32.totalorder %s85_s17, 0  ;;  %p98_p1 = scmp.ne.s32.totalorder %s1527_s13, %s1523_s12 }
   0x5   : > { %p99_p2 = scmp.eq.s32.totalorder %s1598_s15, 1  ;;  %p1088_p3 = scmp.ge.s32.totalorder %s1531_s14, 1 }
   0x6   : > { %s1608_s19 = scalar_select %p86_p0, %s1527_s13, %s88_s18  }
   0x7   : > { %p1610_p4 = por %p99_p2, %p98_p1  ;;  %p149_p5 = scmp.lt.s32.totalorder %s1531_s14, 3 }
   0x9   : > { %p150_p6 = pnand %p1088_p3, %p149_p5 }
   0xa   : > { %s1660_s30 = smul.u32 (!%p150_p6), 11, %s1598_s15  ;;  %s175_s5 = sand.u32 (!%p150_p6), 1, %s1523_s12  }
   0xb   : > { %153 = sbr.rel (%p150_p6) target bundleno = 357 (0x165), region = 32 }
   0xc   : > { %p184_p7 = scmp.lt.s32.totalorder (!%p150_p6), %s1660_s30, 20  ;;  %s1317_s6 = smul.u32 (!%p150_p6), 44, %s175_s5 }
   0xe   : > { %s1751_s12 = scalar_lea.vmem (!%p150_p6), [#allocation2], %s1317_s6  }
  0x10   : > { %v1407_v0 = vld [vmem:[%s1827_s1 + $0x78] sm:$0xff]   ;;  %v1411_v4 = vld [vmem:[%s1827_s1 + $0x70] sm:$0xff]   ;;  %v1415_v8 = vld [vmem:[%s1827_s1 + $0x68] sm:$0xff]   ;;  %s185_s26 = scalar_select %p184_p7, %s1660_s30, 20 }
  0x11   : > { %v1408_v1 = vld [vmem:[%s1827_s1 + $0xf8] sm:$0xff]   ;;  %1213 = vmatprep.subr.bf16.mxu0 %v1407_v0  ;;  %v1412_v5 = vld [vmem:[%s1827_s1 + $0xf0] sm:$0xff]   ;;  %v1416_v9 = vld [vmem:[%s1827_s1 + $0xe8] sm:$0xff]   ;;  %s835_s7 = ssub.s32 (%p1610_p4), 21, %s1660_s30  ;;  %s1183_s8 = smul.u32 (%p1610_p4), 44, %s1598_s15 }
  0x12   : > { %v1409_v2 = vld [vmem:[%s1827_s1 + $0x38] sm:$0xff]   ;;  %1265 = vmatprep.subr.bf16.mxu1 %v1408_v1  ;;  %v1413_v6 = vld [vmem:[%s1827_s1 + $0x30] sm:$0xff]   ;;  %v1417_v10 = vld [vmem:[%s1827_s1 + $0x28] sm:$0xff]   ;;  %s1171_s9 = sshll.u32 %s185_s26, 4  ;;  %p836_p8 = scmp.lt.s32.totalorder (%p1610_p4), %s835_s7, 11 }
  0x13   : > { %v1410_v3 = vld [vmem:[%s1827_s1 + $0xb8] sm:$0xff]   ;;  %1214 = vmatpush3.bf16.msra.mxu0 %v1409_v2  ;;  %v1414_v7 = vld [vmem:[%s1827_s1 + $0xb0] sm:$0xff]   ;;  %v1418_v11 = vld [vmem:[%s1827_s1 + $0xa8] sm:$0xff]   ;;  %s1712_s24 = scalar_lea.vmem %s1826_s0, %s1171_s9  ;;  %s1774_s11 = scalar_lea.vmem (%p1610_p4), %s1829_s3, %s1183_s8  }
  0x14   : > { %1266 = vmatpush3.bf16.msra.mxu1 %v1410_v3  ;;  %1215 = vmatprep.subr.bf16.mxu0 %v1411_v4  ;;  %v1419_v12 = vld [vmem:[%s1827_s1 + $0x60] sm:$0xff]   ;;  %v1423_v16 = vld [vmem:[%s1827_s1 + $0x58] sm:$0xff]   ;;  %v1427_v20 = vld [vmem:[%s1827_s1 + $0x50] sm:$0xff]  }
  0x15   : > { %1267 = vmatprep.subr.bf16.mxu1 %v1412_v5  ;;  %v1420_v13 = vld [vmem:[%s1827_s1 + $0xe0] sm:$0xff]   ;;  %v1424_v17 = vld [vmem:[%s1827_s1 + $0xd8] sm:$0xff]   ;;  %v1428_v21 = vld [vmem:[%s1827_s1 + $0xd0] sm:$0xff]  }
  0x16   : > { %v1421_v14 = vld [vmem:[%s1827_s1 + $0x20] sm:$0xff]   ;;  %v1425_v18 = vld [vmem:[%s1827_s1 + $0x18] sm:$0xff]   ;;  %v1429_v22 = vld [vmem:[%s1827_s1 + $0x10] sm:$0xff]  }
  0x17   : > { %1216 = vmatpush3.bf16.msra.mxu0 %v1413_v6  ;;  %v1422_v15 = vld [vmem:[%s1827_s1 + $0xa0] sm:$0xff]   ;;  %v1426_v19 = vld [vmem:[%s1827_s1 + $0x98] sm:$0xff]   ;;  %v1430_v23 = vld [vmem:[%s1827_s1 + $0x90] sm:$0xff]  }
  0x18   : > { %1268 = vmatpush3.bf16.msra.mxu1 %v1414_v7  ;;  %1217 = vmatprep.subr.bf16.mxu0 %v1415_v8  ;;  %v1431_v24 = vld [vmem:[%s1827_s1 + $0x48] sm:$0xff]   ;;  %v1435_v28 = vld [vmem:[%s1827_s1 + $0x40] sm:$0xff]  }
  0x19   : > { %1269 = vmatprep.subr.bf16.mxu1 %v1416_v9  ;;  %v1432_v25 = vld [vmem:[%s1827_s1 + $0xc8] sm:$0xff]   ;;  %v1436_v29 = vld [vmem:[%s1827_s1 + $0xc0] sm:$0xff]  }
  0x1a   : > { %v1433_v26 = vld [vmem:[%s1827_s1 + $0x8] sm:$0xff]   ;;  %v1437_v30 = vld [vmem:[%s1827_s1] sm:$0xff]  }
  0x1b   : > { %1218 = vmatpush3.bf16.msra.mxu0 %v1417_v10  ;;  %v1434_v27 = vld [vmem:[%s1827_s1 + $0x88] sm:$0xff]   ;;  %v1438_v31 = vld [vmem:[%s1827_s1 + $0x80] sm:$0xff]  }
  0x1c   : > { %1270 = vmatpush3.bf16.msra.mxu1 %v1418_v11  ;;  %1219 = vmatprep.subr.bf16.mxu0 %v1419_v12  ;;  %v1439_v32 = vld [vmem:[%s1712_s24] ss:$16 sps:$4 sm:$0xff]   ;;  %v1441_v33 = vld [vmem:[%s1712_s24 + $0x4] ss:$16 sps:$4 sm:$0xff]   ;;  %v1442_v34 = vld [vmem:[%s1712_s24 + $0x8] ss:$16 sps:$4 sm:$0xff]  }
  0x1d   : > { %1271 = vmatprep.subr.bf16.mxu1 %v1420_v13  ;;  %v1444_v35 = vld [vmem:[%s1712_s24 + $0xc] ss:$16 sps:$4 sm:$0xff]   ;;  %632 = vmatprep.mubr.bf16.mxu0 %v1441_v33  ;;  %v1445_v36 = vld [vmem:[%s1712_s24 + $0x24] ss:$16 sps:$4 sm:$0xff]   ;;  %v1449_v38 = vld [vmem:[%s1712_s24 + $0x20] ss:$16 sps:$4 sm:$0xff]  }
  0x1e   : > { %712 = vmatprep.mubr.bf16.mxu1 %v1444_v35  ;;  %v1447_v37 = vld [vmem:[%s1712_s24 + $0x2c] ss:$16 sps:$4 sm:$0xff]   ;;  %v1450_v39 = vld [vmem:[%s1712_s24 + $0x28] ss:$16 sps:$4 sm:$0xff]   ;;  %v1451_v40 = vld [vmem:[%s1712_s24 + $0x44] ss:$16 sps:$4 sm:$0xff]  }
  0x1f   : > { %1220 = vmatpush3.bf16.msra.mxu0 %v1421_v14  ;;  %v1453_v41 = vld [vmem:[%s1712_s24 + $0x4c] ss:$16 sps:$4 sm:$0xff]   ;;  %v1455_v42 = vld [vmem:[%s1712_s24 + $0x40] ss:$16 sps:$4 sm:$0xff]   ;;  %v1456_v43 = vld [vmem:[%s1712_s24 + $0x48] ss:$16 sps:$4 sm:$0xff]  }
  0x20   : > { %1272 = vmatpush3.bf16.msra.mxu1 %v1422_v15  ;;  %1221 = vmatprep.subr.bf16.mxu0 %v1423_v16  ;;  %v1457_v44 = vld [vmem:[%s1712_s24 + $0x64] ss:$16 sps:$4 sm:$0xff]   ;;  %v1459_v45 = vld [vmem:[%s1712_s24 + $0x6c] ss:$16 sps:$4 sm:$0xff]   ;;  %v1461_v46 = vld [vmem:[%s1712_s24 + $0x60] ss:$16 sps:$4 sm:$0xff]  }
  0x21   : > { %1273 = vmatprep.subr.bf16.mxu1 %v1424_v17  ;;  %v1462_v47 = vld [vmem:[%s1712_s24 + $0x68] ss:$16 sps:$4 sm:$0xff]   ;;  %v1463_v48 = vld [vmem:[%s1712_s24 + $0x84] ss:$16 sps:$4 sm:$0xff]   ;;  %v1465_v49 = vld [vmem:[%s1712_s24 + $0x8c] ss:$16 sps:$4 sm:$0xff]  }
  0x22   : > { %v221_v50 = vld [vmem:[%s1712_s24 + $0xa0] sm:$0xff]  ;;  %v222_v51 = vld [vmem:[%s1712_s24 + $0xa8] sm:$0xff] }
  0x23   : > { %1222 = vmatpush3.bf16.msra.mxu0 %v1425_v18  ;;  %v1467_v52 = vld [vmem:[%s1712_s24 + $0x80] ss:$16 sps:$4 sm:$0xff]   ;;  %v1468_v53 = vld [vmem:[%s1712_s24 + $0x88] ss:$16 sps:$4 sm:$0xff]   ;;  %v1113_v54 = vcombine.high %v221_v50, %v221_v50  ;;  %v1115_v55 = vcombine.high %v222_v51, %v222_v51  ;;  %v1112_v56 = vcombine.low %v221_v50, %v221_v50  ;;  %v1114_v57 = vcombine.low %v222_v51, %v222_v51 }
  0x24   : > { %1274 = vmatpush3.bf16.msra.mxu1 %v1426_v19  ;;  %1223 = vmatprep.subr.bf16.mxu0 %v1427_v20  ;;  %v1745_v60 = vld [vmem:[%s1828_s2] ss:$0 sm:$0xff] }
  0x25   : > { %1275 = vmatprep.subr.bf16.mxu1 %v1428_v21 }
  0x27   : > { %1224 = vmatpush3.bf16.msra.mxu0 %v1429_v22 }
  0x28   : > { %1276 = vmatpush3.bf16.msra.mxu1 %v1430_v23  ;;  %1225 = vmatprep.subr.bf16.mxu0 %v1431_v24 }
  0x29   : > { %1277 = vmatprep.subr.bf16.mxu1 %v1432_v25 }
  0x2b   : > { %1226 = vmatpush3.bf16.msra.mxu0 %v1433_v26 }
  0x2c   : > { %1278 = vmatpush3.bf16.msra.mxu1 %v1434_v27  ;;  %1227 = vmatprep.subr.bf16.mxu0 %v1435_v28 }
  0x2d   : > { %1279 = vmatprep.subr.bf16.mxu1 %v1436_v29 }
  0x2f   : > { %1228 = vmatpush3.bf16.msra.mxu0 %v1437_v30 }
  0x30   : > { %1280 = vmatpush3.bf16.msra.mxu1 %v1438_v31 }
  0x32   : > { %633 = vmatmul.mubr.bf16.vlgmr.msra.gmra.mxu0 %v1439_v32 }
  0x33   : > { %713 = vmatmul.mubr.bf16.vlgmr.msra.gmra.mxu1 %v1442_v34  ;;  %640 = vmatprep.mubr.bf16.mxu0 %v1445_v36 }
  0x34   : > { %720 = vmatprep.mubr.bf16.mxu1 %v1447_v37 }
  0x3a   : > { %641 = vmatmul.mubr.bf16.gmra.mxu0 %v1449_v38 }
  0x3b   : > { %721 = vmatmul.mubr.bf16.gmra.mxu1 %v1450_v39  ;;  %648 = vmatprep.mubr.bf16.mxu0 %v1451_v40 }
  0x3c   : > { %728 = vmatprep.mubr.bf16.mxu1 %v1453_v41 }
  0x42   : > { %649 = vmatmul.mubr.bf16.gmra.mxu0 %v1455_v42 }
  0x43   : > { %729 = vmatmul.mubr.bf16.gmra.mxu1 %v1456_v43  ;;  %656 = vmatprep.mubr.bf16.mxu0 %v1457_v44 }
  0x44   : > { %736 = vmatprep.mubr.bf16.mxu1 %v1459_v45 }
  0x4a   : > { %657 = vmatmul.mubr.bf16.gmra.mxu0 %v1461_v46 }
  0x4b   : > { %737 = vmatmul.mubr.bf16.gmra.mxu1 %v1462_v47  ;;  %664 = vmatprep.mubr.bf16.mxu0 %v1463_v48 }
  0x4c   : > { %744 = vmatprep.mubr.bf16.mxu1 %v1465_v49 }
  0x52   : > { %665 = vmatmul.mubr.bf16.gmra.mxu0 %v1467_v52 }
  0x53   : > { %745 = vmatmul.mubr.bf16.gmra.mxu1 %v1468_v53  ;;  %672 = vmatprep.mubr.bf16.mxu0 %v1113_v54 }
  0x54   : > { %752 = vmatprep.mubr.bf16.mxu1 %v1115_v55 }
  0x5a   : > { %673 = vmatmul.mubr.bf16.gmra.mxu0 %v1112_v56 }
  0x5b   : > { %753 = vmatmul.mubr.bf16.gmra.mxu1 %v1114_v57 }
  0xf2   : > { %v1229_v58 = vpop.f32.mrf.mxu0 }
  0xf3   : > { %v1281_v59 = vpop.f32.mrf.mxu1 }
  0xf4   : > { %v1230_v61 = vpop.f32.mrf.mxu0 }
  0xf5   : > { %v1231_v62 = vadd.f32 %v1230_v61, %v1229_v58  ;;  %v1282_v63 = vpop.f32.mrf.mxu1 }
  0xf6   : > { %v1232_v0 = vpop.f32.mrf.mxu0  ;;  %v1283_v4 = vadd.f32 %v1282_v63, %v1281_v59 }
  0xf7   : > { %v635_v1 = vadd.f32 %v1231_v62, %v1745_v60  ;;  %v1284_v2 = vpop.f32.mrf.mxu1 }
  0xf8   : > { %v1233_v3 = vpop.f32.mrf.mxu0 }
  0xf9   : > { %v1234_v5 = vadd.f32 %v1233_v3, %v1232_v0  ;;  %v1285_v6 = vpop.f32.mrf.mxu1  ;;  %v715_v8 = vadd.f32 %v1283_v4, %v635_v1 }
  0xfa   : > { %v1235_v7 = vpop.f32.mrf.mxu0  ;;  %v1286_v10 = vadd.f32 %v1285_v6, %v1284_v2 }
  0xfb   : > { %v638_v9 = vadd.f32 %v1234_v5, %v1745_v60  ;;  %v1287_v11 = vpop.f32.mrf.mxu1  ;;  %v760_v17 = vmax.f32 %v715_v8, 0.0 }
  0xfc   : > { %v1236_v12 = vpop.f32.mrf.mxu0 }
  0xfd   : > { %v718_v13 = vadd.f32 %v1286_v10, %v638_v9  ;;  %v1237_v14 = vadd.f32 %v1236_v12, %v1235_v7  ;;  %v1288_v15 = vpop.f32.mrf.mxu1 }
  0xfe   : > { %v1238_v16 = vpop.f32.mrf.mxu0  ;;  %v1289_v23 = vadd.f32 %v1288_v15, %v1287_v11 }
  0xff   : > { %v761_v18 = vmax.f32 %v718_v13, 0.0  ;;  %v643_v19 = vadd.f32 %v1237_v14, %v1745_v60  ;;  %v1290_v20 = vpop.f32.mrf.mxu1 }
 0x100   : > { %v1239_v21 = vpop.f32.mrf.mxu0 }
 0x101   : > { %v1187_v22 = vpack.c.bf16 %v761_v18, %v760_v17  ;;  %v1240_v24 = vadd.f32 %v1239_v21, %v1238_v16  ;;  %v1291_v25 = vpop.f32.mrf.mxu1  ;;  %v723_v27 = vadd.f32 %v1289_v23, %v643_v19 }
 0x102   : > { %v1241_v26 = vpop.f32.mrf.mxu0  ;;  %v1292_v29 = vadd.f32 %v1291_v25, %v1290_v20 }
 0x103   : > { %1188 = vst [vmem:[%s1751_s12] sm:$0xff] %v1187_v22   ;;  %v646_v28 = vadd.f32 %v1240_v24, %v1745_v60  ;;  %v1293_v30 = vpop.f32.mrf.mxu1  ;;  %v762_v36 = vmax.f32 %v723_v27, 0.0 }
 0x104   : > { %v1242_v31 = vpop.f32.mrf.mxu0 }
 0x105   : > { %v726_v32 = vadd.f32 %v1292_v29, %v646_v28  ;;  %v1243_v33 = vadd.f32 %v1242_v31, %v1241_v26  ;;  %v1294_v34 = vpop.f32.mrf.mxu1 }
 0x106   : > { %v1244_v35 = vpop.f32.mrf.mxu0  ;;  %v1295_v42 = vadd.f32 %v1294_v34, %v1293_v30 }
 0x107   : > { %v763_v37 = vmax.f32 %v726_v32, 0.0  ;;  %v651_v38 = vadd.f32 %v1243_v33, %v1745_v60  ;;  %v1296_v39 = vpop.f32.mrf.mxu1 }
 0x108   : > { %v1245_v40 = vpop.f32.mrf.mxu0 }
 0x109   : > { %v1192_v41 = vpack.c.bf16 %v763_v37, %v762_v36  ;;  %v1246_v43 = vadd.f32 %v1245_v40, %v1244_v35  ;;  %v1297_v44 = vpop.f32.mrf.mxu1  ;;  %v731_v46 = vadd.f32 %v1295_v42, %v651_v38 }
 0x10a   : > { %v1247_v45 = vpop.f32.mrf.mxu0  ;;  %v1298_v48 = vadd.f32 %v1297_v44, %v1296_v39 }
 0x10b   : > { %1209 = vst [vmem:[%s1751_s12 + $0x8] sm:$0xff] %v1192_v41   ;;  %v654_v47 = vadd.f32 %v1246_v43, %v1745_v60  ;;  %v1299_v49 = vpop.f32.mrf.mxu1  ;;  %v764_v55 = vmax.f32 %v731_v46, 0.0 }
 0x10c   : > { %v1248_v50 = vpop.f32.mrf.mxu0 }
 0x10d   : > { %v734_v51 = vadd.f32 %v1298_v48, %v654_v47  ;;  %v1249_v52 = vadd.f32 %v1248_v50, %v1247_v45  ;;  %v1300_v53 = vpop.f32.mrf.mxu1 }
 0x10e   : > { %v1250_v54 = vpop.f32.mrf.mxu0  ;;  %v1301_v62 = vadd.f32 %v1300_v53, %v1299_v49 }
 0x10f   : > { %v765_v56 = vmax.f32 %v734_v51, 0.0  ;;  %v659_v57 = vadd.f32 %v1249_v52, %v1745_v60  ;;  %v1302_v58 = vpop.f32.mrf.mxu1 }
 0x110   : > { %v1251_v59 = vpop.f32.mrf.mxu0 }
 0x111   : > { %v1197_v61 = vpack.c.bf16 %v765_v56, %v764_v55  ;;  %v1252_v63 = vadd.f32 %v1251_v59, %v1250_v54  ;;  %v1303_v0 = vpop.f32.mrf.mxu1  ;;  %v739_v2 = vadd.f32 %v1301_v62, %v659_v57 }
 0x112   : > { %v1253_v1 = vpop.f32.mrf.mxu0  ;;  %v1304_v4 = vadd.f32 %v1303_v0, %v1302_v58 }
 0x113   : > { %1210 = vst [vmem:[%s1751_s12 + $0x10] sm:$0xff] %v1197_v61   ;;  %v662_v3 = vadd.f32 %v1252_v63, %v1745_v60  ;;  %v1305_v5 = vpop.f32.mrf.mxu1  ;;  %v766_v11 = vmax.f32 %v739_v2, 0.0 }
 0x114   : > { %v1254_v6 = vpop.f32.mrf.mxu0 }
 0x115   : > { %v742_v7 = vadd.f32 %v1304_v4, %v662_v3  ;;  %v1255_v8 = vadd.f32 %v1254_v6, %v1253_v1  ;;  %v1306_v9 = vpop.f32.mrf.mxu1 }
 0x116   : > { %v1256_v10 = vpop.f32.mrf.mxu0  ;;  %v1307_v17 = vadd.f32 %v1306_v9, %v1305_v5 }
 0x117   : > { %v767_v12 = vmax.f32 %v742_v7, 0.0  ;;  %v667_v13 = vadd.f32 %v1255_v8, %v1745_v60  ;;  %v1308_v14 = vpop.f32.mrf.mxu1 }
 0x118   : > { %v1257_v15 = vpop.f32.mrf.mxu0 }
 0x119   : > { %v1202_v16 = vpack.c.bf16 %v767_v12, %v766_v11  ;;  %v1258_v18 = vadd.f32 %v1257_v15, %v1256_v10  ;;  %v1309_v19 = vpop.f32.mrf.mxu1  ;;  %v747_v21 = vadd.f32 %v1307_v17, %v667_v13 }
 0x11a   : > { %v1259_v20 = vpop.f32.mrf.mxu0  ;;  %v1310_v23 = vadd.f32 %v1309_v19, %v1308_v14 }
 0x11b   : > { %1211 = vst [vmem:[%s1751_s12 + $0x18] sm:$0xff] %v1202_v16   ;;  %v670_v22 = vadd.f32 %v1258_v18, %v1745_v60  ;;  %v1311_v24 = vpop.f32.mrf.mxu1  ;;  %v768_v30 = vmax.f32 %v747_v21, 0.0 }
 0x11c   : > { %v1260_v25 = vpop.f32.mrf.mxu0 }
 0x11d   : > { %v750_v26 = vadd.f32 %v1310_v23, %v670_v22  ;;  %v1261_v27 = vadd.f32 %v1260_v25, %v1259_v20  ;;  %v1312_v28 = vpop.f32.mrf.mxu1 }
 0x11e   : > { %v1262_v29 = vpop.f32.mrf.mxu0  ;;  %v1313_v33 = vadd.f32 %v1312_v28, %v1311_v24 }
 0x11f   : > { %v769_v31 = vmax.f32 %v750_v26, 0.0  ;;  %v675_v32 = vadd.f32 %v1261_v27, %v1745_v60  ;;  %v1314_v34 = vpop.f32.mrf.mxu1 }
 0x120   : > { %v1263_v35 = vpop.f32.mrf.mxu0 }
 0x121   : > { %v1207_v36 = vpack.c.bf16 %v769_v31, %v768_v30  ;;  %v755_v37 = vadd.f32 %v1313_v33, %v675_v32  ;;  %v1315_v38 = vpop.f32.mrf.mxu1 }
 0x123   : > { %1212 = vst [vmem:[%s1751_s12 + $0x20] sm:$0xff] %v1207_v36   ;;  %v770_v39 = vmax.f32 %v755_v37, 0.0  ;;  %833 = sbr.rel (!%p1610_p4) target bundleno = 357 (0x165), region = 36 }
 0x125   : > { %v1182_v40 = vpack.c.bf16 %v770_v39, %v770_v39 }
 0x127   : > { %826 = vst [vmem:[%s1751_s12 + $0x28] sm:$0xf] %v1182_v40 }
 0x128   : > { %s1838_s7 = smov (!%p836_p8, %s835_s7), 11 }
 0x129   : > { %s1159_s14 = sshll.u32 %s1838_s7, 6 }
 0x12a   : > { %p1162_p9 = scmp.eq.s32.totalorder %s1159_s14, 0 }
 0x12b   : > { %1473 = sdivrem.u32 (!%p1162_p9), %s1838_s7, 11 }
 0x12c   : > { %844 = sbr.rel (%p1162_p9) target bundleno = 357 (0x165), region = 40 }
 0x134   : > { %s1780_s20 = spop.drf %1473 }
 0x135   : > { %p1163_p10 = scmp.le.s32.totalorder %s1780_s20, 0 }
 0x136   : > { %s1831_s15 = smov (!%p1163_p10), %s1774_s11  ;;  %s1832_s30 = smov (!%p1163_p10), %s1751_s12 }
 0x137   : > { %1041 = sbr.rel (%p1163_p10) target bundleno = 332 (0x14c), region = 112  ;;  %s1789_s17 = smov (!%p1163_p10), 0  }
 0x138   : > { %s1791_s18 = smov (!%p1163_p10), 0  }
 0x13c LB: >> { %v862_v60 = vld [vmem:[%s1539_s30] sm:$0xf]  ;;  %v864_v41 = vld [vmem:[%s1539_s30 + $0x4] sm:$0xf]  ;;  %v866_v42 = vld [vmem:[%s1539_s30 + $0x8] sm:$0xf]  ;;  %s1547_s18 = sphi %s1791_s18, %s856_s18   ;;  %s1543_s17 = sphi %s1789_s17, %s1833_s17   ;;  %s1539_s30 = sphi %s1832_s30, %s889_s30   ;;  %s1535_s15 = sphi %s1831_s15, %s890_s15  }
 0x13d   : >> { %863 = vst [vmem:[%s1535_s15] sm:$0xf] %v862_v60  ;;  %865 = vst [vmem:[%s1535_s15 + $0x4] sm:$0xf] %v864_v41  ;;  %v868_v43 = vld [vmem:[%s1539_s30 + $0xc] sm:$0xf]  ;;  %s884_s21 = sadd.s32 1, %s1543_s17 }
 0x13e   : >> { %867 = vst [vmem:[%s1535_s15 + $0x8] sm:$0xf] %v866_v42  ;;  %v870_v44 = vld [vmem:[%s1539_s30 + $0x10] sm:$0xf]  ;;  %v872_v45 = vld [vmem:[%s1539_s30 + $0x14] sm:$0xf]  ;;  %p885_p11 = scmp.ge.s32.totalorder %s884_s21, %s1780_s20 }
 0x13f   : >> { %869 = vst [vmem:[%s1535_s15 + $0xc] sm:$0xf] %v868_v43  ;;  %871 = vst [vmem:[%s1535_s15 + $0x10] sm:$0xf] %v870_v44  ;;  %v874_v46 = vld [vmem:[%s1539_s30 + $0x18] sm:$0xf] }
 0x140   : >> { %873 = vst [vmem:[%s1535_s15 + $0x14] sm:$0xf] %v872_v45  ;;  %v876_v47 = vld [vmem:[%s1539_s30 + $0x1c] sm:$0xf]  ;;  %v878_v48 = vld [vmem:[%s1539_s30 + $0x20] sm:$0xf] }
 0x141   : >> { %875 = vst [vmem:[%s1535_s15 + $0x18] sm:$0xf] %v874_v46  ;;  %877 = vst [vmem:[%s1535_s15 + $0x1c] sm:$0xf] %v876_v47  ;;  %v880_v49 = vld [vmem:[%s1539_s30 + $0x24] sm:$0xf] }
 0x142   : >> { %879 = vst [vmem:[%s1535_s15 + $0x20] sm:$0xf] %v878_v48  ;;  %v882_v50 = vld [vmem:[%s1539_s30 + $0x28] sm:$0xf]  ;;  %881 = vst [vmem:[%s1535_s15 + $0x24] sm:$0xf] %v880_v49 }
 0x143   : >> { %883 = vst [vmem:[%s1535_s15 + $0x28] sm:$0xf] %v882_v50  ;;  %s1840_s21 = smov (%p885_p11, %s884_s21), 0  ;;  %s856_s18 = sadd.s32 1, %s1547_s18  }
 0x144   : >> { %s887_s22 = smul.u32 44, %s1840_s21  ;;  %p855_p12 = scmp.ge.s32.totalorder %s856_s18, %s1780_s20 }
 0x145   : >> { %s1833_s17 = smov %s1840_s21 }
 0x146   : >> { %s889_s30 = scalar_lea.vmem %s1751_s12, %s887_s22 [#allocation2]   ;;  %s890_s15 = scalar_lea.vmem %s1774_s11, %s887_s22  }
 0x147   : > { %858 = sbr.rel (!%p855_p12) target bundleno = 316 (0x13c), region = 118 }
 0x14c PF: > { %1475 = sdivrem.u32 %s1838_s7, 11 }
 0x14d   : > { %s1164_s23 = smul.u32 44, %s1780_s20 }
 0x14f   : > { %s895_s24 = scalar_lea.vmem %s1751_s12, %s1164_s23 [#allocation2]   ;;  %s897_s25 = scalar_lea.vmem %s1774_s11, %s1164_s23  }
 0x155   : > { %s1476_s26 = spop.drf %1475 }
 0x156   : > { %p1166_p13 = scmp.le.s32.totalorder %s1476_s26, 0 }
 0x157   : > { %s1549_s27 = smov (!%p1166_p13), %s897_s25   ;;  %s1553_s28 = smov (!%p1166_p13), %s895_s24  }
 0x158   : > { %1055 = sbr.rel (%p1166_p13) target bundleno = 357 (0x165), region = 123  ;;  %s1557_s29 = smov (!%p1166_p13), 0  }
 0x159   : > { %s1561_s4 = smov (!%p1166_p13), 0  }
 0x15d LB: >> { %v907_v51 = vld [vmem:[%s1555_s28] sm:$0xf]  ;;  %s909_s5 = sadd.s32 1, %s1559_s29  ;;  %s901_s4 = sadd.s32 1, %s1563_s4   ;;  %s1563_s4 = sphi %s1561_s4, %s901_s4   ;;  %s1559_s29 = sphi %s1557_s29, %s1558_s29   ;;  %s1555_s28 = sphi %s1553_s28, %s914_s28   ;;  %s1551_s27 = sphi %s1549_s27, %s915_s27  }
 0x15e   : >> { %908 = vst [vmem:[%s1551_s27] sm:$0xf] %v907_v51  ;;  %p910_p0 = scmp.ge.s32.totalorder %s909_s5, %s1476_s26  ;;  %p900_p1 = scmp.ge.s32.totalorder %s901_s4, %s1476_s26 }
 0x160   : >> { %s1842_s5 = smov (%p910_p0, %s909_s5), 0  ;;  %903 = sbr.rel (!%p900_p1) target bundleno = 349 (0x15d), region = 129 }
 0x161   : >> { %s1167_s6 = sshll.u32 %s1842_s5, 2  ;;  %s1558_s29 = smov %s1842_s5  }
 0x162   : >> { %s914_s28 = scalar_lea.vmem %s895_s24, %s1167_s6 [#allocation2]   ;;  %s915_s27 = scalar_lea.vmem %s897_s25, %s1167_s6  }
 0x165 PF: > { %p10_p2 = scmp.ge.s32.totalorder %s1600_s16, 4   ;;  %s1834_s12 = smov %s1527_s13 }
 0x166   : > { %s1835_s13 = smov %s1608_s19  ;;  %s1836_s14 = smov %s1600_s16 }
 0x167   :  { %12 = sbr.rel (!%p10_p2) target bundleno = 2 (0x2), region = 140 }

// kernel: core_net_forward.5
= control target key start
LH: loop header
LB: loop body
LE: loop exit
PB: predicated region body
PF: predicated region fallthrough
CT: control target
= control target key end

     0   :  { %s1526_s12 = smov 0   ;;  %s1528_s13 = smov 0   ;;  %s1760_s0 = inlined_call_operand.vmem [shape: bf16[98,576], index: 0, kind: input, shape index: {}]   ;;  %s1761_s1 = inlined_call_operand.vmem [shape: bf16[576,128], index: 1, kind: input, shape index: {}]   ;;  %s1762_s2 = inlined_call_operand.vmem [shape: f32[1,128], index: 2, kind: input, shape index: {}]   ;;  %s1763_s3 = inlined_call_operand.vmem [shape: f32[98,128], index: 3, kind: output, shape index: {}]  }
   0x1   :  { %s1530_s14 = smov 0  }
   0x2 LB: > { %s1539_s15 = sadd.s32 4294967295, %s1472_s14   ;;  %s1541_s16 = sadd.s32 1, %s1472_s14   ;;  %s1472_s14 = sphi %s1530_s14, %s1770_s14   ;;  %s1468_s13 = sphi %s1528_s13, %s1769_s13   ;;  %s1464_s12 = sphi %s1526_s12, %s1768_s12  }
   0x3   : > { %s85_s17 = ssub.s32 %s1472_s14, %s1541_s16  ;;  %s88_s18 = sadd.s32 1, %s1468_s13 }
   0x4   : > { %p86_p0 = scmp.eq.s32.totalorder %s85_s17, 0  ;;  %p98_p1 = scmp.ne.s32.totalorder %s1468_s13, %s1464_s12 }
   0x5   : > { %p99_p2 = scmp.eq.s32.totalorder %s1539_s15, 1  ;;  %p1073_p3 = scmp.ge.s32.totalorder %s1472_s14, 1 }
   0x6   : > { %s1549_s19 = scalar_select %p86_p0, %s1468_s13, %s88_s18  }
   0x7   : > { %p1551_p4 = por %p99_p2, %p98_p1  ;;  %p149_p5 = scmp.lt.s32.totalorder %s1472_s14, 3 }
   0x9   : > { %p150_p6 = pnand %p1073_p3, %p149_p5 }
   0xa   : > { %s1598_s28 = smul.u32 (!%p150_p6), 7, %s1539_s15  ;;  %s175_s17 = sand.u32 (!%p150_p6), 1, %s1464_s12  }
   0xb   : > { %153 = sbr.rel (%p150_p6) target bundleno = 340 (0x154), region = 32 }
   0xc   : > { %p184_p7 = scmp.lt.s32.totalorder (!%p150_p6), %s1598_s28, 12  ;;  %s1261_s18 = smul.u32 (!%p150_p6), 56, %s175_s17 }
   0xe   : > { %s1695_s12 = scalar_lea.vmem (!%p150_p6), [#allocation2], %s1261_s18  }
  0x10   : > { %v1352_v0 = vld [vmem:[%s1761_s1 + $0x78] sm:$0xff]   ;;  %v1356_v4 = vld [vmem:[%s1761_s1 + $0x70] sm:$0xff]   ;;  %v1360_v8 = vld [vmem:[%s1761_s1 + $0x68] sm:$0xff]   ;;  %s185_s24 = scalar_select %p184_p7, %s1598_s28, 12  ;;  %vm609_vm0 = vcmask 523264  }
  0x11   : > { %v1353_v1 = vld [vmem:[%s1761_s1 + $0xf8] sm:$0xff]   ;;  %1149 = vmatprep.subr.bf16.mxu0 %v1352_v0  ;;  %v1357_v5 = vld [vmem:[%s1761_s1 + $0xf0] sm:$0xff]   ;;  %v1361_v9 = vld [vmem:[%s1761_s1 + $0xe8] sm:$0xff]   ;;  %s836_s21 = ssub.s32 (%p1551_p4), 13, %s1598_s28  ;;  %s1148_s22 = smul.u32 (%p1551_p4), 56, %s1539_s15 }
  0x12   : > { %v1354_v2 = vld [vmem:[%s1761_s1 + $0x38] sm:$0xff]   ;;  %1189 = vmatprep.subr.bf16.mxu1 %v1353_v1  ;;  %v1358_v6 = vld [vmem:[%s1761_s1 + $0x30] sm:$0xff]   ;;  %v1362_v10 = vld [vmem:[%s1761_s1 + $0x28] sm:$0xff]   ;;  %s1262_s7 = smul.u32 20, %s185_s24  ;;  %p837_p8 = scmp.lt.s32.totalorder (%p1551_p4), %s836_s21, 7 }
  0x13   : > { %v1355_v3 = vld [vmem:[%s1761_s1 + $0xb8] sm:$0xff]   ;;  %1150 = vmatpush3.bf16.msra.mxu0 %v1354_v2  ;;  %v1359_v7 = vld [vmem:[%s1761_s1 + $0xb0] sm:$0xff]   ;;  %v1363_v11 = vld [vmem:[%s1761_s1 + $0xa8] sm:$0xff]   ;;  %s1711_s25 = scalar_lea.vmem (%p1551_p4), %s1763_s3, %s1148_s22  }
  0x14   : > { %1190 = vmatpush3.bf16.msra.mxu1 %v1355_v3  ;;  %1151 = vmatprep.subr.bf16.mxu0 %v1356_v4  ;;  %v1364_v12 = vld [vmem:[%s1761_s1 + $0x60] sm:$0xff]   ;;  %v1368_v16 = vld [vmem:[%s1761_s1 + $0x58] sm:$0xff]   ;;  %v1372_v20 = vld [vmem:[%s1761_s1 + $0x50] sm:$0xff]   ;;  %s1653_s24 = scalar_lea.vmem %s1760_s0, %s1262_s7 }
  0x15   : > { %1191 = vmatprep.subr.bf16.mxu1 %v1357_v5  ;;  %v1365_v13 = vld [vmem:[%s1761_s1 + $0xe0] sm:$0xff]   ;;  %v1369_v17 = vld [vmem:[%s1761_s1 + $0xd8] sm:$0xff]   ;;  %v1373_v21 = vld [vmem:[%s1761_s1 + $0xd0] sm:$0xff]  }
  0x16   : > { %v1366_v14 = vld [vmem:[%s1761_s1 + $0x20] sm:$0xff]   ;;  %v1370_v18 = vld [vmem:[%s1761_s1 + $0x18] sm:$0xff]   ;;  %v1374_v22 = vld [vmem:[%s1761_s1 + $0x10] sm:$0xff]  }
  0x17   : > { %1152 = vmatpush3.bf16.msra.mxu0 %v1358_v6  ;;  %v1367_v15 = vld [vmem:[%s1761_s1 + $0xa0] sm:$0xff]   ;;  %v1371_v19 = vld [vmem:[%s1761_s1 + $0x98] sm:$0xff]   ;;  %v1375_v23 = vld [vmem:[%s1761_s1 + $0x90] sm:$0xff]  }
  0x18   : > { %1192 = vmatpush3.bf16.msra.mxu1 %v1359_v7  ;;  %1153 = vmatprep.subr.bf16.mxu0 %v1360_v8  ;;  %v1376_v24 = vld [vmem:[%s1761_s1 + $0x48] sm:$0xff]   ;;  %v1380_v28 = vld [vmem:[%s1761_s1 + $0x40] sm:$0xff]   ;;  %v1390_v36 = vld [vmem:[%s1761_s1 + $0x118] sm:$0xff]  }
  0x19   : > { %1193 = vmatprep.subr.bf16.mxu1 %v1361_v9  ;;  %v1377_v25 = vld [vmem:[%s1761_s1 + $0xc8] sm:$0xff]   ;;  %v1381_v29 = vld [vmem:[%s1761_s1 + $0xc0] sm:$0xff]   ;;  %v1397_v39 = vld [vmem:[%s1761_s1 + $0x110] sm:$0xff]  }
  0x1a   : > { %v1378_v26 = vld [vmem:[%s1761_s1 + $0x8] sm:$0xff]   ;;  %v1382_v30 = vld [vmem:[%s1761_s1] sm:$0xff]   ;;  %v1400_v43 = vld [vmem:[%s1653_s24 + $0x5c] ss:$20 sps:$4 sm:$0xff]  }
  0x1b   : > { %1154 = vmatpush3.bf16.msra.mxu0 %v1362_v10  ;;  %v1379_v27 = vld [vmem:[%s1761_s1 + $0x88] sm:$0xff]   ;;  %v1383_v31 = vld [vmem:[%s1761_s1 + $0x80] sm:$0xff]   ;;  %v219_v46 = vld [vmem:[%s1653_s24 + $0x78] sm:$0xff] }
  0x1c   : > { %1194 = vmatpush3.bf16.msra.mxu1 %v1363_v11  ;;  %1155 = vmatprep.subr.bf16.mxu0 %v1364_v12  ;;  %v1384_v32 = vld [vmem:[%s1653_s24] ss:$20 sps:$4 sm:$0xff]   ;;  %v1386_v33 = vld [vmem:[%s1653_s24 + $0x4] ss:$20 sps:$4 sm:$0xff]   ;;  %v1387_v34 = vld [vmem:[%s1653_s24 + $0x8] ss:$20 sps:$4 sm:$0xff]   ;;  %v1092_v50 = vcombine.high %v219_v46, %v219_v46  ;;  %v1091_v52 = vcombine.low %v219_v46, %v219_v46 }
  0x1d   : > { %1195 = vmatprep.subr.bf16.mxu1 %v1365_v13  ;;  %v1389_v35 = vld [vmem:[%s1653_s24 + $0xc] ss:$20 sps:$4 sm:$0xff]   ;;  %654 = vmatprep.mubr.bf16.mxu0 %v1386_v33  ;;  %v1393_v38 = vld [vmem:[%s1653_s24 + $0x34] ss:$20 sps:$4 sm:$0xff]   ;;  %v1396_v41 = vld [vmem:[%s1653_s24 + $0x30] ss:$20 sps:$4 sm:$0xff]  }
  0x1e   : > { %718 = vmatprep.mubr.bf16.mxu1 %v1389_v35  ;;  %v1391_v37 = vld [vmem:[%s1653_s24 + $0x2c] ss:$20 sps:$4 sm:$0xff]   ;;  %v1395_v40 = vld [vmem:[%s1653_s24 + $0x28] ss:$20 sps:$4 sm:$0xff]   ;;  %v1402_v48 = vld [vmem:[%s1653_s24 + $0x50] ss:$20 sps:$4 sm:$0xff]  }
  0x1f   : > { %1156 = vmatpush3.bf16.msra.mxu0 %v1366_v14  ;;  %v1398_v42 = vld [vmem:[%s1653_s24 + $0x54] ss:$20 sps:$4 sm:$0xff]   ;;  %v1409_v45 = vld [vmem:[%s1761_s1 + $0x100] sm:$0xff]   ;;  %v1403_v49 = vld [vmem:[%s1653_s24 + $0x58] ss:$20 sps:$4 sm:$0xff]  }
  0x20   : > { %1196 = vmatpush3.bf16.msra.mxu1 %v1367_v15  ;;  %1157 = vmatprep.subr.bf16.mxu0 %v1368_v16  ;;  %v1404_v44 = vld [vmem:[%s1761_s1 + $0x108] sm:$0xff]   ;;  %v220_v47 = vld [vmem:[%s1653_s24 + $0x80] sm:$0xff] }
  0x21   : > { %1197 = vmatprep.subr.bf16.mxu1 %v1369_v17  ;;  %v1094_v51 = vcombine.high %v220_v47, %v220_v47  ;;  %v1093_v53 = vcombine.low %v220_v47, %v220_v47  ;;  %v1410_v54 = vld [vmem:[%s1653_s24 + $0x10] ss:$20 sps:$4 sm:$0xff]   ;;  %v1411_v55 = vld [vmem:[%s1653_s24 + $0x60] ss:$20 sps:$4 sm:$0xff]   ;;  %v1412_v56 = vld [vmem:[%s1653_s24 + $0x38] ss:$20 sps:$4 sm:$0xff]  }
  0x22   : > { %v1413_v57 = vld [vmem:[%s1653_s24 + $0x88] ss:$0 sps:$4 sm:$0xff]  }
  0x23   : > { %1158 = vmatpush3.bf16.msra.mxu0 %v1370_v18 }
  0x24   : > { %1198 = vmatpush3.bf16.msra.mxu1 %v1371_v19  ;;  %1159 = vmatprep.subr.bf16.mxu0 %v1372_v20 }
  0x25   : > { %1199 = vmatprep.subr.bf16.mxu1 %v1373_v21  ;;  %v1075_v21 = vld [vmem:[%s1762_s2] ss:$0 sm:$0xff] }
  0x27   : > { %1160 = vmatpush3.bf16.msra.mxu0 %v1374_v22 }
  0x28   : > { %1200 = vmatpush3.bf16.msra.mxu1 %v1375_v23  ;;  %1161 = vmatprep.subr.bf16.mxu0 %v1376_v24 }
  0x29   : > { %1201 = vmatprep.subr.bf16.mxu1 %v1377_v25 }
  0x2b   : > { %1162 = vmatpush3.bf16.msra.mxu0 %v1378_v26 }
  0x2c   : > { %1202 = vmatpush3.bf16.msra.mxu1 %v1379_v27  ;;  %1163 = vmatprep.subr.bf16.mxu0 %v1380_v28 }
  0x2d   : > { %1203 = vmatprep.subr.bf16.mxu1 %v1381_v29 }
  0x2f   : > { %1164 = vmatpush3.bf16.msra.mxu0 %v1382_v30 }
  0x30   : > { %1204 = vmatpush3.bf16.msra.mxu1 %v1383_v31  ;;  %1237 = vmatprep.subr.bf16.mxu0 %v1390_v36 }
  0x31   : > { %1253 = vmatprep.subr.bf16.mxu1 %v1390_v36 }
  0x32   : > { %655 = vmatmul.mubr.bf16.vlgmr.msra.gmra.mxu0 %v1384_v32 }
  0x33   : > { %719 = vmatmul.mubr.bf16.vlgmr.msra.gmra.mxu1 %v1387_v34  ;;  %1238 = vmatpush3.bf16.msra.mxu0 %v1390_v36 }
  0x34   : > { %1257 = vmatpush3.bf16.msra.mxu1 %v1390_v36  ;;  %662 = vmatprep.mubr.bf16.mxu0 %v1391_v37 }
  0x35   : > { %726 = vmatprep.mubr.bf16.mxu1 %v1393_v38  ;;  %1239 = vmatprep.subr.bf16.mxu0 %v1397_v39 }
  0x36   : > { %1254 = vmatprep.subr.bf16.mxu1 %v1397_v39 }
  0x37   : > { %1240 = vmatpush3.bf16.msra.mxu0 %v1397_v39 }
  0x38   : > { %1258 = vmatpush3.bf16.msra.mxu1 %v1397_v39  ;;  %1241 = vmatprep.subr.bf16.mxu0 %v1404_v44 }
  0x39   : > { %1255 = vmatprep.subr.bf16.mxu1 %v1404_v44 }
  0x3a   : > { %663 = vmatmul.mubr.bf16.gmra.mxu0 %v1395_v40 }
  0x3b   : > { %727 = vmatmul.mubr.bf16.gmra.mxu1 %v1396_v41  ;;  %670 = vmatprep.mubr.bf16.mxu0 %v1398_v42 }
  0x3c   : > { %734 = vmatprep.mubr.bf16.mxu1 %v1400_v43  ;;  %1242 = vmatpush3.bf16.msra.mxu0 %v1404_v44 }
  0x3d   : > { %1259 = vmatpush3.bf16.msra.mxu1 %v1404_v44  ;;  %1243 = vmatprep.subr.bf16.mxu0 %v1409_v45 }
  0x3e   : > { %1256 = vmatprep.subr.bf16.mxu1 %v1409_v45 }
  0x40   : > { %1244 = vmatpush3.bf16.msra.mxu0 %v1409_v45 }
  0x41   : > { %1260 = vmatpush3.bf16.msra.mxu1 %v1409_v45 }
  0x42   : > { %671 = vmatmul.mubr.bf16.gmra.mxu0 %v1402_v48 }
  0x43   : > { %735 = vmatmul.mubr.bf16.gmra.mxu1 %v1403_v49  ;;  %678 = vmatprep.mubr.bf16.mxu0 %v1092_v50 }
  0x44   : > { %742 = vmatprep.mubr.bf16.mxu1 %v1094_v51 }
  0x4a   : > { %679 = vmatmul.mubr.bf16.gmra.mxu0 %v1091_v52 }
  0x4b   : > { %743 = vmatmul.mubr.bf16.gmra.mxu1 %v1093_v53  ;;  %1245 = vmatprep.mubr.msk.bf16.mxu0 %vm609_vm0, %v1410_v54 }
  0x4c   : > { %1249 = vmatprep.mubr.msk.bf16.mxu1 %vm609_vm0, %v1411_v55 }
  0x52   : > { %1246 = vmatmul.mubr.msk.bf16.vlgmr.msra.gmra.mxu0 %vm609_vm0, %v1412_v56 }
  0x53   : > { %1250 = vmatmul.mubr.msk.bf16.vlgmr.msra.gmra.mxu1 %vm609_vm0, %v1413_v57 }
  0xf2   : > { %v1165_v58 = vpop.f32.mrf.mxu0 }
  0xf3   : > { %v1205_v59 = vpop.f32.mrf.mxu1 }
  0xf4   : > { %v1166_v60 = vpop.f32.mrf.mxu0 }
  0xf5   : > { %v1206_v61 = vpop.f32.mrf.mxu1  ;;  %v1167_v19 = vadd.f32 %v1166_v60, %v1165_v58 }
  0xf6   : > { %v1168_v62 = vpop.f32.mrf.mxu0  ;;  %v1207_v39 = vadd.f32 %v1206_v61, %v1205_v59 }
  0xf7   : > { %v1208_v63 = vpop.f32.mrf.mxu1  ;;  %v657_v29 = vadd.f32 %v1167_v19, %v1075_v21 }
  0xf8   : > { %v1169_v0 = vpop.f32.mrf.mxu0 }
  0xf9   : > { %v1209_v1 = vpop.f32.mrf.mxu1  ;;  %v1170_v31 = vadd.f32 %v1169_v0, %v1168_v62  ;;  %v721_v50 = vadd.f32 %v1207_v39, %v657_v29 }
  0xfa   : > { %v1171_v2 = vpop.f32.mrf.mxu0  ;;  %v1210_v55 = vadd.f32 %v1209_v1, %v1208_v63 }
  0xfb   : > { %v1211_v3 = vpop.f32.mrf.mxu1  ;;  %v660_v46 = vadd.f32 %v1170_v31, %v1075_v21 }
  0xfc   : > { %v1172_v4 = vpop.f32.mrf.mxu0 }
  0xfd   : > { %v1212_v5 = vpop.f32.mrf.mxu1  ;;  %v1173_v17 = vadd.f32 %v1172_v4, %v1171_v2  ;;  %v724_v1 = vadd.f32 %v1210_v55, %v660_v46 }
  0xfe   : > { %v1174_v6 = vpop.f32.mrf.mxu0  ;;  %v1213_v32 = vadd.f32 %v1212_v5, %v1211_v3 }
  0xff   : > { %v1214_v7 = vpop.f32.mrf.mxu1  ;;  %v665_v25 = vadd.f32 %v1173_v17, %v1075_v21 }
 0x100   : > { %v1175_v8 = vpop.f32.mrf.mxu0 }
 0x101   : > { %v1215_v9 = vpop.f32.mrf.mxu1  ;;  %v1176_v26 = vadd.f32 %v1175_v8, %v1174_v6  ;;  %v729_v42 = vadd.f32 %v1213_v32, %v665_v25 }
 0x102   : > { %v1177_v10 = vpop.f32.mrf.mxu0  ;;  %v1216_v47 = vadd.f32 %v1215_v9, %v1214_v7 }
 0x103   : > { %v1217_v11 = vpop.f32.mrf.mxu1  ;;  %v668_v40 = vadd.f32 %v1176_v26, %v1075_v21 }
 0x104   : > { %v1178_v12 = vpop.f32.mrf.mxu0 }
 0x105   : > { %v1218_v13 = vpop.f32.mrf.mxu1  ;;  %v1179_v23 = vadd.f32 %v1178_v12, %v1177_v10  ;;  %v732_v59 = vadd.f32 %v1216_v47, %v668_v40 }
 0x106   : > { %v1180_v14 = vpop.f32.mrf.mxu0  ;;  %v1219_v44 = vadd.f32 %v1218_v13, %v1217_v11 }
 0x107   : > { %v1220_v15 = vpop.f32.mrf.mxu1  ;;  %v673_v36 = vadd.f32 %v1179_v23, %v1075_v21 }
 0x108   : > { %v1181_v16 = vpop.f32.mrf.mxu0 }
 0x109   : > { %v1221_v18 = vpop.f32.mrf.mxu1  ;;  %v1182_v37 = vadd.f32 %v1181_v16, %v1180_v14  ;;  %v737_v54 = vadd.f32 %v1219_v44, %v673_v36 }
 0x10a   : > { %v1183_v20 = vpop.f32.mrf.mxu0  ;;  %v1222_v60 = vadd.f32 %v1221_v18, %v1220_v15 }
 0x10b   : > { %v1223_v22 = vpop.f32.mrf.mxu1  ;;  %v676_v51 = vadd.f32 %v1182_v37, %v1075_v21 }
 0x10c   : > { %v1184_v24 = vpop.f32.mrf.mxu0 }
 0x10d   : > { %v1185_v27 = vadd.f32 %v1184_v24, %v1183_v20  ;;  %v1224_v28 = vpop.f32.mrf.mxu1  ;;  %v740_v6 = vadd.f32 %v1222_v60, %v676_v51 }
 0x10e   : > { %v1186_v30 = vpop.f32.mrf.mxu0  ;;  %v1225_v34 = vadd.f32 %v1224_v28, %v1223_v22 }
 0x10f   : > { %v681_v33 = vadd.f32 %v1185_v27, %v1075_v21  ;;  %v1226_v35 = vpop.f32.mrf.mxu1 }
 0x110   : > { %v1187_v38 = vpop.f32.mrf.mxu0 }
 0x111   : > { %v1227_v41 = vpop.f32.mrf.mxu1  ;;  %v745_v43 = vadd.f32 %v1225_v34, %v681_v33 }
 0x112   : > { %v1247_v45 = vpop.f32.mrf.mxu0 }
 0x113   : > { %v793_v48 = vadd.f32 %v1247_v45, %v729_v42  ;;  %v1251_v49 = vpop.f32.mrf.mxu1 }
 0x114   : > { %v809_v52 = vadd.f32 %v1251_v49, %v745_v43  ;;  %v784_v53 = vpop.f32.mrf.mxu0 }
 0x115   : > { %v816_v56 = vmax.f32 %v793_v48, 0.0  ;;  %v785_v57 = vadd.f32 %v784_v53, %v721_v50  ;;  %v800_v58 = vpop.f32.mrf.mxu1 }
 0x116   : > { %v820_v61 = vmax.f32 %v809_v52, 0.0  ;;  %v801_v62 = vadd.f32 %v800_v58, %v737_v54  ;;  %v1248_v0 = vpop.f32.mrf.mxu0 }
 0x117   : > { %823 = vst [vmem:[%s1695_s12 + $0x10] sm:$0xff] %v816_v56  ;;  %v814_v2 = vmax.f32 %v785_v57, 0.0  ;;  %v796_v3 = vadd.f32 %v1248_v0, %v732_v59  ;;  %v1252_v63 = vpop.f32.mrf.mxu1 }
 0x118   : > { %827 = vst [vmem:[%s1695_s12 + $0x30] sm:$0xff] %v820_v61  ;;  %v818_v4 = vmax.f32 %v801_v62, 0.0  ;;  %v787_v5 = vpop.f32.mrf.mxu0 }
 0x119   : > { %821 = vst [vmem:[%s1695_s12] sm:$0xff] %v814_v2  ;;  %v817_v7 = vmax.f32 %v796_v3, 0.0  ;;  %v788_v8 = vadd.f32 %v787_v5, %v724_v1  ;;  %v803_v9 = vpop.f32.mrf.mxu1 }
 0x11a   : > { %825 = vst [vmem:[%s1695_s12 + $0x20] sm:$0xff] %v818_v4  ;;  %v804_v10 = vadd.f32 %v803_v9, %v740_v6  ;;  %834 = sbr.rel (!%p1551_p4) target bundleno = 340 (0x154), region = 36 }
 0x11b   : > { %824 = vst [vmem:[%s1695_s12 + $0x18] sm:$0xff] %v817_v7  ;;  %v815_v11 = vmax.f32 %v788_v8, 0.0 }
 0x11c   : > { %v819_v12 = vmax.f32 %v804_v10, 0.0 }
 0x11d   : > { %822 = vst [vmem:[%s1695_s12 + $0x8] sm:$0xff] %v815_v11 }
 0x11e   : > { %826 = vst [vmem:[%s1695_s12 + $0x28] sm:$0xff] %v819_v12 }
 0x11f   : > { %s1772_s21 = smov (!%p837_p8, %s836_s21), 7 }
 0x120   : > { %s1136_s26 = sshll.u32 %s1772_s21, 7 }
 0x121   : > { %p1139_p9 = scmp.eq.s32.totalorder %s1136_s26, 0 }
 0x122   : > { %1414 = sdivrem.u32 (!%p1139_p9), %s1772_s21, 7 }
 0x123   : > { %845 = sbr.rel (%p1139_p9) target bundleno = 340 (0x154), region = 40 }
 0x12b   : > { %s1717_s20 = spop.drf %1414 }
 0x12c   : > { %p1140_p10 = scmp.le.s32.totalorder %s1717_s20, 0 }
 0x12d   : > { %s1765_s15 = smov (!%p1140_p10), %s1711_s25  ;;  %s1766_s28 = smov (!%p1140_p10), %s1695_s12 }
 0x12e   : > { %1026 = sbr.rel (%p1140_p10) target bundleno = 315 (0x13b), region = 116  ;;  %s1726_s27 = smov (!%p1140_p10), 0  }
 0x12f   : > { %s1728_s29 = smov (!%p1140_p10), 0  }
 0x133 LB: >> { %v922_v13 = vld [vmem:[%s1480_s28] sm:$0xff]  ;;  %v924_v14 = vld [vmem:[%s1480_s28 + $0x8] sm:$0xff]  ;;  %v926_v15 = vld [vmem:[%s1480_s28 + $0x10] sm:$0xff]  ;;  %s936_s30 = sadd.s32 1, %s1484_s27  ;;  %s916_s29 = sadd.s32 1, %s1488_s29   ;;  %s1488_s29 = sphi %s1728_s29, %s916_s29   ;;  %s1484_s27 = sphi %s1726_s27, %s1767_s27   ;;  %s1480_s28 = sphi %s1766_s28, %s941_s28   ;;  %s1476_s15 = sphi %s1765_s15, %s942_s15  }
 0x134   : >> { %923 = vst [vmem:[%s1476_s15] sm:$0xff] %v922_v13  ;;  %925 = vst [vmem:[%s1476_s15 + $0x8] sm:$0xff] %v924_v14  ;;  %v928_v16 = vld [vmem:[%s1480_s28 + $0x18] sm:$0xff]  ;;  %v930_v17 = vld [vmem:[%s1480_s28 + $0x20] sm:$0xff]  ;;  %p937_p11 = scmp.ge.s32.totalorder %s936_s30, %s1717_s20  ;;  %p915_p12 = scmp.ge.s32.totalorder %s916_s29, %s1717_s20 }
 0x135   : >> { %927 = vst [vmem:[%s1476_s15 + $0x10] sm:$0xff] %v926_v15  ;;  %v932_v18 = vld [vmem:[%s1480_s28 + $0x28] sm:$0xff]  ;;  %929 = vst [vmem:[%s1476_s15 + $0x18] sm:$0xff] %v928_v16  ;;  %v934_v19 = vld [vmem:[%s1480_s28 + $0x30] sm:$0xff] }
 0x136   : >> { %931 = vst [vmem:[%s1476_s15 + $0x20] sm:$0xff] %v930_v17  ;;  %933 = vst [vmem:[%s1476_s15 + $0x28] sm:$0xff] %v932_v18  ;;  %s1774_s30 = smov (%p937_p11, %s936_s30), 0  ;;  %918 = sbr.rel (!%p915_p12) target bundleno = 307 (0x133), region = 122 }
 0x137   : >> { %935 = vst [vmem:[%s1476_s15 + $0x30] sm:$0xff] %v934_v19  ;;  %s939_s4 = smul.u32 56, %s1774_s30  ;;  %s1767_s27 = smov %s1774_s30 }
 0x139   : >> { %s941_s28 = scalar_lea.vmem %s1695_s12, %s939_s4 [#allocation2]   ;;  %s942_s15 = scalar_lea.vmem %s1711_s25, %s939_s4  }
 0x13b PF: > { %1416 = sdivrem.u32 %s1772_s21, 7 }
 0x13c   : > { %s1141_s5 = smul.u32 56, %s1717_s20 }
 0x13e   : > { %s947_s6 = scalar_lea.vmem %s1695_s12, %s1141_s5 [#allocation2]   ;;  %s949_s7 = scalar_lea.vmem %s1711_s25, %s1141_s5  }
 0x144   : > { %s1417_s8 = spop.drf %1416 }
 0x145   : > { %p1143_p13 = scmp.le.s32.totalorder %s1417_s8, 0 }
 0x146   : > { %s1490_s9 = smov (!%p1143_p13), %s949_s7   ;;  %s1494_s10 = smov (!%p1143_p13), %s947_s6  }
 0x147   : > { %1040 = sbr.rel (%p1143_p13) target bundleno = 340 (0x154), region = 127  ;;  %s1498_s11 = smov (!%p1143_p13), 0  }
 0x148   : > { %s1502_s14 = smov (!%p1143_p13), 0  }
 0x14c LB: >> { %v959_v20 = vld [vmem:[%s1496_s10] sm:$0xff]  ;;  %s961_s17 = sadd.s32 1, %s1500_s11  ;;  %s953_s14 = sadd.s32 1, %s1504_s14   ;;  %s1504_s14 = sphi %s1502_s14, %s953_s14   ;;  %s1500_s11 = sphi %s1498_s11, %s1499_s11   ;;  %s1496_s10 = sphi %s1494_s10, %s966_s10   ;;  %s1492_s9 = sphi %s1490_s9, %s967_s9  }
 0x14d   : >> { %960 = vst [vmem:[%s1492_s9] sm:$0xff] %v959_v20  ;;  %p962_p0 = scmp.ge.s32.totalorder %s961_s17, %s1417_s8  ;;  %p952_p1 = scmp.ge.s32.totalorder %s953_s14, %s1417_s8 }
 0x14f   : >> { %s1776_s17 = smov (%p962_p0, %s961_s17), 0  ;;  %955 = sbr.rel (!%p952_p1) target bundleno = 332 (0x14c), region = 133 }
 0x150   : >> { %s1144_s18 = sshll.u32 %s1776_s17, 3  ;;  %s1499_s11 = smov %s1776_s17  }
 0x151   : >> { %s966_s10 = scalar_lea.vmem %s947_s6, %s1144_s18 [#allocation2]   ;;  %s967_s9 = scalar_lea.vmem %s949_s7, %s1144_s18  }
 0x154 PF: > { %p10_p2 = scmp.ge.s32.totalorder %s1541_s16, 4   ;;  %s1768_s12 = smov %s1468_s13 }
 0x155   : > { %s1769_s13 = smov %s1549_s19  ;;  %s1770_s14 = smov %s1541_s16 }
 0x156   :  { %12 = sbr.rel (!%p10_p2) target bundleno = 2 (0x2), region = 144 }

</bundles_post_ra>
